<compile_context>
chip_gen: v7x
topology: tpu7x:2x2x1
jax: 0.10.0
libtpu: 0.0.40
codegen_flags: <defaults>
</compile_context>

<pallas_src>
import jax
import jax.numpy as jnp
from jax.experimental import pallas as pl
from jax.experimental.pallas import tpu as pltpu

LN_EPS = 1e-5  # nn.LayerNorm default


def _round_up(x, m):
    return ((x + m - 1) // m) * m


def _vmem_limit_bytes():
    """Generation-aware VMEM cap: ~75% of physical, capped at 112 MiB."""
    cap = 64 * 1024 * 1024  # conservative default (v7x-sized) if the query fails
    try:
        cap = int(pltpu.get_tpu_info().vmem_capacity_bytes)
    except Exception:
        pass
    return min((cap * 3) // 4, 112 * 1024 * 1024)


def _choose_row_tile(N, d_eff, in_itemsizes, size_p, out_itemsize, w_itemsize,
                     tk, num_k, vmem_limit):
    """Largest row tile whose estimated VMEM footprint fits the budget."""
    N8 = _round_up(max(N, 8), 8)
    wbuf = 1 if num_k == 1 else 2                                   # weight buffers
    resident = wbuf * w_itemsize * (sum(d_eff) * tk + tk * size_p)  # W1 + W2
    resident += 4 * (2 * sum(d_eff) + tk + size_p)                  # gamma/beta/b1/b2
    budget = int(vmem_limit * 0.8) - resident
    per_row = 2 * sum(d * b for d, b in zip(d_eff, in_itemsizes))   # dbl-buffered inputs
    per_row += 2 * size_p * out_itemsize                            # dbl-buffered output
    per_row += w_itemsize * sum(d_eff)                              # ln scratches
    per_row += 4 * size_p                                           # f32 accumulator
    per_row += 4 * (sum(d_eff) + tk)                                # live f32 temporaries
    for rt in (1024, 512, 256, 128, 64, 32, 16, 8):
        if rt > N8:
            continue
        if N8 >= 256 and rt > N8 // 2:
            continue  # keep >= 2 row-grid steps so both v7x TensorCores get work
        if rt * per_row <= budget:
            return rt
    return 8


def _make_kernel(num_inputs, true_d_total, eps):
    n = num_inputs

    def kernel(*refs):
        # refs = x_0..x_{n-1}, gamma_0.., beta_0.., W1seg_0.., b1, W2, b2, out,
        #        ln_scratch_0.., acc_scratch
        x_refs = refs[0:n]
        g_refs = refs[n:2 * n]
        bt_refs = refs[2 * n:3 * n]
        w1_refs = refs[3 * n:4 * n]
        b1_ref, w2_ref, b2_ref, out_ref = refs[4 * n:4 * n + 4]
        ln_refs = refs[4 * n + 4:5 * n + 4]
        acc_ref = refs[5 * n + 4]

        k = pl.program_id(1)

        @pl.when(k == 0)
        def _ln_and_init():
            # Segment-wise LayerNorm over the *virtual* concatenated feature
            # axis: partial sums per input are combined, so no lane-axis
            # concat copy is ever materialized.  var = E[x^2] - mean^2 so the
            # zero-padded columns of x[0] (padded to the lane-dense width in
            # the wrapper) contribute exactly nothing to the statistics.
            xs = [r[...].astype(jnp.float32) for r in x_refs]
            s = xs[0].sum(axis=-1, keepdims=True)
            sq = (xs[0] * xs[0]).sum(axis=-1, keepdims=True)
            for xi in xs[1:]:
                s = s + xi.sum(axis=-1, keepdims=True)
                sq = sq + (xi * xi).sum(axis=-1, keepdims=True)
            inv_d = 1.0 / float(true_d_total)
            mean = s * inv_d
            var = sq * inv_d - mean * mean
            # NOTE: zero-padded remainder *rows* give var == 0; eps keeps the
            # rsqrt finite and those rows are sliced off after the kernel.
            inv_std = jax.lax.rsqrt(var + eps)
            for i in range(n):
                ln = (xs[i] - mean) * inv_std
                ln = (ln * g_refs[i][...].astype(jnp.float32)
                      + bt_refs[i][...].astype(jnp.float32))
                ln_refs[i][...] = ln.astype(ln_refs[i].dtype)
            acc_ref[...] = jnp.zeros_like(acc_ref)

        # One hidden-dim tile of:  acc += relu(ln @ W1[:, k] + b1[k]) @ W2[k, :]
        # MXU operands in the weight dtype (bf16 by default), f32 accumulation.
        h = jnp.dot(ln_refs[0][...], w1_refs[0][...],
                    preferred_element_type=jnp.float32)
        for i in range(1, n):
            h = h + jnp.dot(ln_refs[i][...], w1_refs[i][...],
                            preferred_element_type=jnp.float32)
        h = jnp.maximum(h + b1_ref[...].astype(jnp.float32), 0.0)
        acc_ref[...] += jnp.dot(h.astype(w2_ref.dtype), w2_ref[...],
                                preferred_element_type=jnp.float32)

        @pl.when(k == pl.num_programs(1) - 1)
        def _finalize():
            # Residual uses x[0] only; it is already padded to size_p in the
            # wrapper (zero columns), so the add and the store are unmasked.
            res = x_refs[0][...].astype(jnp.float32)
            out_ref[...] = (acc_ref[...] + b2_ref[...].astype(jnp.float32)
                            + res).astype(out_ref.dtype)

    return kernel


def _build_call(meta, row_tile, n_pad, in_itemsizes, out_dtype, vmem_limit,
                single_buffer_resident):
    n = len(meta["dims"])
    d_eff = meta["d_eff"]
    size_p, tk, num_k = meta["size_p"], meta["tk"], meta["num_k"]
    hidden_p = meta["hidden_p"]
    cdt = meta["compute_dtype"]
    w_item = jnp.dtype(cdt).itemsize
    out_item = jnp.dtype(out_dtype).itemsize

    def spec(shape, index_map, single):
        # Operands whose block index never changes only need ONE VMEM buffer;
        # the default double-buffering just doubles their footprint.
        if single:
            try:
                return pl.BlockSpec(shape, index_map,
                                    pipeline_mode=pl.Buffered(1))
            except Exception:  # pipeline_mode / Buffered unavailable -> default
                pass
        return pl.BlockSpec(shape, index_map)

    row_map = lambda i, k: (i, 0)
    const_map = lambda i, k: (0, 0)
    hid_map = lambda i, k: (0, k)
    w2_map = lambda i, k: (k, 0)

    const_1 = single_buffer_resident                    # constant over whole grid
    kconst_1 = single_buffer_resident and num_k == 1    # W1/b1/W2 resident iff 1 k-step

    in_specs = []
    in_specs += [spec((row_tile, d), row_map, False) for d in d_eff]   # x_i
    in_specs += [spec((1, d), const_map, const_1) for d in d_eff]      # gamma_i
    in_specs += [spec((1, d), const_map, const_1) for d in d_eff]      # beta_i
    in_specs += [spec((d, tk), hid_map, kconst_1) for d in d_eff]      # W1 segments
    in_specs += [spec((1, tk), hid_map, kconst_1),                     # b1
                 spec((tk, size_p), w2_map, kconst_1),                 # W2
                 spec((1, size_p), const_map, const_1)]                # b2
    out_specs = pl.BlockSpec((row_tile, size_p), row_map)

    scratch_shapes = [pltpu.VMEM((row_tile, d), cdt) for d in d_eff]   # ln cache
    scratch_shapes.append(pltpu.VMEM((row_tile, size_p), jnp.float32)) # accumulator

    n_row_tiles = n_pad // row_tile
    flops = 2 * n_pad * (sum(d_eff) * hidden_p + hidden_p * size_p)
    w_bytes = w_item * (sum(d_eff) * hidden_p + hidden_p * size_p)
    w_passes = 1 if num_k == 1 else n_row_tiles
    bytes_accessed = (sum(n_pad * d * b for d, b in zip(d_eff, in_itemsizes))
                      + n_pad * size_p * out_item + w_passes * w_bytes)

    return pl.pallas_call(
        _make_kernel(n, meta["d_total"], LN_EPS),
        out_shape=jax.ShapeDtypeStruct((n_pad, size_p), out_dtype),
        grid_spec=pltpu.PrefetchScalarGridSpec(
            num_scalar_prefetch=0,
            grid=(n_row_tiles, num_k),
            in_specs=in_specs,
            out_specs=out_specs,
            scratch_shapes=scratch_shapes,
        ),
        compiler_params=pltpu.CompilerParams(
            dimension_semantics=("parallel", "arbitrary"),
            vmem_limit_bytes=int(vmem_limit),
        ),
        cost_estimate=pl.CostEstimate(flops=int(flops),
                                      transcendentals=int(n_pad),
                                      bytes_accessed=int(bytes_accessed)),
    )


def prepare_params(params, size, inp_sizes, *, compute_dtype=jnp.bfloat16):
    """One-time weight prep: cast + lane-dense zero padding + per-segment split.

    Done once at init so the per-call forward never rewrites weights in HBM.
    """
    dims = [int(size)] + [int(d) for d in inp_sizes]
    d_total = sum(dims)
    hidden = int(params["w1"].shape[1])
    assert int(params["w1"].shape[0]) == d_total

    size_p = _round_up(size, 128)
    hidden_p = _round_up(hidden, 128)
    if hidden_p > 1024:            # stream hidden through the 'arbitrary' grid axis
        tk = 512
        hidden_p = _round_up(hidden, tk)
    else:
        tk = hidden_p
    num_k = hidden_p // tk

    wdt = jnp.float32 if compute_dtype is None else compute_dtype
    # x[0]'s segment is padded to the lane-dense output width so the residual
    # add and the output store are both unmasked; zero rows/cols are exact.
    d_eff = [size_p] + dims[1:]

    gammas, betas, w1_segs = [], [], []
    off = 0
    for d, de in zip(dims, d_eff):
        g = jnp.pad(params["gamma"][:, off:off + d], ((0, 0), (0, de - d)))
        bt = jnp.pad(params["beta"][:, off:off + d], ((0, 0), (0, de - d)))
        w = jnp.pad(params["w1"][off:off + d, :].astype(wdt),
                    ((0, de - d), (0, hidden_p - hidden)))
        gammas.append(g)
        betas.append(bt)
        w1_segs.append(w)
        off += d

    b1 = jnp.pad(params["b1"], ((0, 0), (0, hidden_p - hidden)))
    w2 = jnp.pad(params["w2"].astype(wdt),
                 ((0, hidden_p - hidden), (0, size_p - size)))
    b2 = jnp.pad(params["b2"], ((0, 0), (0, size_p - size)))

    return dict(
        gammas=gammas, betas=betas, w1_segs=w1_segs, b1=b1, w2=w2, b2=b2,
        meta=dict(size=int(size), size_p=size_p, hidden=hidden, hidden_p=hidden_p,
                  tk=tk, num_k=num_k, dims=dims, d_eff=d_eff, d_total=d_total,
                  compute_dtype=wdt),
    )


def multi_input_positionwise_ffn(inputs, prepared, *, out_dtype=None):
    """inputs: list of (B, S, d_i) arrays; inputs[0] has d_0 == size."""
    meta = prepared["meta"]
    x0 = inputs[0]
    B, S = x0.shape[0], x0.shape[1]
    N = B * S
    size, size_p = meta["size"], meta["size_p"]
    dims, d_eff = meta["dims"], meta["d_eff"]
    assert [int(a.shape[-1]) for a in inputs] == dims, "input widths mismatch"
    out_dtype = x0.dtype if out_dtype is None else out_dtype

    in_itemsizes = [jnp.dtype(a.dtype).itemsize for a in inputs]
    vmem_limit = _vmem_limit_bytes()
    row_tile = _choose_row_tile(
        N, d_eff, in_itemsizes, size_p, jnp.dtype(out_dtype).itemsize,
        jnp.dtype(meta["compute_dtype"]).itemsize, meta["tk"], meta["num_k"],
        vmem_limit)
    n_pad = pl.cdiv(N, row_tile) * row_tile

    flat = []
    for a, d, de in zip(inputs, dims, d_eff):
        a2 = a.reshape(N, d)
        if n_pad != N or de != d:
            a2 = jnp.pad(a2, ((0, n_pad - N), (0, de - d)))
        flat.append(a2)

    args = (*flat, *prepared["gammas"], *prepared["betas"],
            *prepared["w1_segs"], prepared["b1"], prepared["w2"],
            prepared["b2"])

    try:
        out = _build_call(meta, row_tile, n_pad, in_itemsizes, out_dtype,
                          vmem_limit, single_buffer_resident=True)(*args)
    except Exception:
        # Fallback: default double buffering (e.g. if Buffered(1) is rejected
        # by this Pallas/Mosaic version).  Semantics are identical.
        out = _build_call(meta, row_tile, n_pad, in_itemsizes, out_dtype,
                          vmem_limit, single_buffer_resident=False)(*args)

    if n_pad != N or size_p != size:
        out = out[:N, :size]
    return out.reshape(B, S, size)


def init_params(key, size, hidden_size, inp_sizes):
    d_total = size + sum(inp_sizes)
    k1, k2, k3, k4 = jax.random.split(key, 4)
    # nn.Linear stores weight (out, in); we keep them pre-transposed (in, out)
    # so the kernel does row-major x @ W.
    w1 = jax.random.normal(k1, (d_total, hidden_size), jnp.float32) * 0.05
    b1 = jax.random.normal(k2, (1, hidden_size), jnp.float32) * 0.01
    w2 = jax.random.normal(k3, (hidden_size, size), jnp.float32) * 0.05
    b2 = jax.random.normal(k4, (1, size), jnp.float32) * 0.01
    gamma = jnp.ones((1, d_total), jnp.float32)
    beta = jnp.zeros((1, d_total), jnp.float32)
    return {"gamma": gamma, "beta": beta, "w1": w1, "b1": b1, "w2": w2, "b2": b2}


def _reference(inputs, params):
    """Pure-JAX f32 reference of the PyTorch forward (eval mode)."""
    xcat = jnp.concatenate(inputs, axis=-1).astype(jnp.float32)
    mean = jnp.mean(xcat, axis=-1, keepdims=True)
    var = jnp.mean((xcat - mean) ** 2, axis=-1, keepdims=True)
    ln = (xcat - mean) / jnp.sqrt(var + LN_EPS)
    ln = ln * params["gamma"][0] + params["beta"][0]
    h = jnp.maximum(ln @ params["w1"] + params["b1"][0], 0.0)
    o = h @ params["w2"] + params["b2"][0]
    return o + inputs[0]


if __name__ == "__main__":
    # size=32, one extra input of width 16, hidden=64, batch=2, seq=8
    size, hidden, inp_sizes = 32, 64, [16]
    B, S = 2, 8

    key = jax.random.PRNGKey(0)
    kx0, kx1, kp = jax.random.split(key, 3)
    x0 = jax.random.normal(kx0, (B, S, size), jnp.float32)
    x1 = jax.random.normal(kx1, (B, S, inp_sizes[0]), jnp.float32)
    params = init_params(kp, size, hidden, inp_sizes)

    # Weight cast / pad / per-segment split happens ONCE here, not per call.
    prepared = prepare_params(params, size, inp_sizes, compute_dtype=jnp.bfloat16)

    out = multi_input_positionwise_ffn([x0, x1], prepared)  # out_dtype=f32 (default)
    out = jax.block_until_ready(out)

    ref = _reference([x0, x1], params)
    assert out.shape == (B, S, size)
    # bf16 MXU operands (f32 accumulation) => loosened tolerance vs pure-f32 ref.
    assert jnp.allclose(out, ref, atol=2e-2, rtol=2e-2), "mismatch vs reference"

    print("KERNEL_OK")
</pallas_src>

<mosaic_0001>
module attributes {stable_mosaic.version = 11 : i64} {
  func.func @kernel(%arg0: i32, %arg1: i32, %arg2: memref<16x128xf32, #tpu.memory_space<vmem>>, %arg3: memref<16x16xf32, #tpu.memory_space<vmem>>, %arg4: memref<1x128xf32, #tpu.memory_space<vmem>>, %arg5: memref<1x16xf32, #tpu.memory_space<vmem>>, %arg6: memref<1x128xf32, #tpu.memory_space<vmem>>, %arg7: memref<1x16xf32, #tpu.memory_space<vmem>>, %arg8: memref<128x128xbf16, #tpu.memory_space<vmem>>, %arg9: memref<16x128xbf16, #tpu.memory_space<vmem>>, %arg10: memref<1x128xf32, #tpu.memory_space<vmem>>, %arg11: memref<128x128xbf16, #tpu.memory_space<vmem>>, %arg12: memref<1x128xf32, #tpu.memory_space<vmem>>, %arg13: memref<16x128xf32, #tpu.memory_space<vmem>>, %arg14: memref<16x128xbf16, #tpu.memory_space<vmem>>, %arg15: memref<16x16xbf16, #tpu.memory_space<vmem>>, %arg16: memref<16x128xf32, #tpu.memory_space<vmem>>) attributes {dimension_semantics = [#tpu.dimension_semantics<parallel>, #tpu.dimension_semantics<arbitrary>], iteration_bounds = array<i64: 1, 1>, scalar_prefetch = 0 : i64, scratch_operands = 3 : i64, tpu.core_type = #tpu.core_type<tc>, window_params = [{transform_indices = @transform_0, window_bounds = array<i64: 16, 128>}, {transform_indices = @transform_1, window_bounds = array<i64: 16, 16>}, {pipeline_mode = #tpu.pipeline_mode<synchronous>, transform_indices = @transform_2, window_bounds = array<i64: 1, 128>}, {pipeline_mode = #tpu.pipeline_mode<synchronous>, transform_indices = @transform_3, window_bounds = array<i64: 1, 16>}, {pipeline_mode = #tpu.pipeline_mode<synchronous>, transform_indices = @transform_4, window_bounds = array<i64: 1, 128>}, {pipeline_mode = #tpu.pipeline_mode<synchronous>, transform_indices = @transform_5, window_bounds = array<i64: 1, 16>}, {pipeline_mode = #tpu.pipeline_mode<synchronous>, transform_indices = @transform_6, window_bounds = array<i64: 128, 128>}, {pipeline_mode = #tpu.pipeline_mode<synchronous>, transform_indices = @transform_7, window_bounds = array<i64: 16, 128>}, {pipeline_mode = #tpu.pipeline_mode<synchronous>, transform_indices = @transform_8, window_bounds = array<i64: 1, 128>}, {pipeline_mode = #tpu.pipeline_mode<synchronous>, transform_indices = @transform_9, window_bounds = array<i64: 128, 128>}, {pipeline_mode = #tpu.pipeline_mode<synchronous>, transform_indices = @transform_10, window_bounds = array<i64: 1, 128>}, {transform_indices = @transform_11, window_bounds = array<i64: 16, 128>}]} {
    %c0_i32 = arith.constant 0 : i32
    %0 = arith.cmpi eq, %arg1, %c0_i32 : i32
    %1 = arith.extui %0 : i1 to i32
    %c0_i32_0 = arith.constant 0 : i32
    %2 = arith.cmpi ne, %1, %c0_i32_0 : i32
    scf.if %2 {
      %c0_21 = arith.constant 0 : index
      %c0_22 = arith.constant 0 : index
      %24 = vector.load %arg2[%c0_21, %c0_22] : memref<16x128xf32, #tpu.memory_space<vmem>>, vector<16x128xf32>
      %c0_23 = arith.constant 0 : index
      %c0_24 = arith.constant 0 : index
      %25 = vector.load %arg3[%c0_23, %c0_24] : memref<16x16xf32, #tpu.memory_space<vmem>>, vector<16x16xf32>
      %cst_25 = arith.constant dense<0.000000e+00> : vector<16xf32>
      %26 = vector.multi_reduction <add>, %24, %cst_25 [1] : vector<16x128xf32> to vector<16xf32>
      %27 = vector.shape_cast %26 : vector<16xf32> to vector<16x1xf32>
      %28 = arith.mulf %24, %24 : vector<16x128xf32>
      %cst_26 = arith.constant dense<0.000000e+00> : vector<16xf32>
      %29 = vector.multi_reduction <add>, %28, %cst_26 [1] : vector<16x128xf32> to vector<16xf32>
      %30 = vector.shape_cast %29 : vector<16xf32> to vector<16x1xf32>
      %cst_27 = arith.constant dense<0.000000e+00> : vector<16xf32>
      %31 = vector.multi_reduction <add>, %25, %cst_27 [1] : vector<16x16xf32> to vector<16xf32>
      %32 = vector.shape_cast %31 : vector<16xf32> to vector<16x1xf32>
      %33 = arith.addf %27, %32 : vector<16x1xf32>
      %34 = arith.mulf %25, %25 : vector<16x16xf32>
      %cst_28 = arith.constant dense<0.000000e+00> : vector<16xf32>
      %35 = vector.multi_reduction <add>, %34, %cst_28 [1] : vector<16x16xf32> to vector<16xf32>
      %36 = vector.shape_cast %35 : vector<16xf32> to vector<16x1xf32>
      %37 = arith.addf %30, %36 : vector<16x1xf32>
      %cst_29 = arith.constant 0.020833334 : f32
      %38 = vector.broadcast %cst_29 : f32 to vector<16x1xf32>
      %39 = arith.mulf %33, %38 : vector<16x1xf32>
      %cst_30 = arith.constant 0.020833334 : f32
      %40 = vector.broadcast %cst_30 : f32 to vector<16x1xf32>
      %41 = arith.mulf %37, %40 : vector<16x1xf32>
      %42 = arith.mulf %39, %39 : vector<16x1xf32>
      %43 = arith.subf %41, %42 : vector<16x1xf32>
      %cst_31 = arith.constant 9.99999974E-6 : f32
      %44 = vector.broadcast %cst_31 : f32 to vector<16x1xf32>
      %45 = arith.addf %43, %44 : vector<16x1xf32>
      %46 = math.rsqrt %45 : vector<16x1xf32>
      %47 = vector.broadcast %39 : vector<16x1xf32> to vector<16x128xf32>
      %48 = arith.subf %24, %47 : vector<16x128xf32>
      %49 = vector.broadcast %46 : vector<16x1xf32> to vector<16x128xf32>
      %50 = arith.mulf %48, %49 : vector<16x128xf32>
      %c0_32 = arith.constant 0 : index
      %c0_33 = arith.constant 0 : index
      %51 = vector.load %arg4[%c0_32, %c0_33] : memref<1x128xf32, #tpu.memory_space<vmem>>, vector<1x128xf32>
      %52 = vector.broadcast %51 : vector<1x128xf32> to vector<16x128xf32>
      %53 = arith.mulf %50, %52 : vector<16x128xf32>
      %c0_34 = arith.constant 0 : index
      %c0_35 = arith.constant 0 : index
      %54 = vector.load %arg6[%c0_34, %c0_35] : memref<1x128xf32, #tpu.memory_space<vmem>>, vector<1x128xf32>
      %55 = vector.broadcast %54 : vector<1x128xf32> to vector<16x128xf32>
      %56 = arith.addf %53, %55 : vector<16x128xf32>
      %57 = arith.truncf %56 : vector<16x128xf32> to vector<16x128xbf16>
      %c0_36 = arith.constant 0 : index
      %c0_37 = arith.constant 0 : index
      %58 = vector.load %arg14[%c0_36, %c0_37] : memref<16x128xbf16, #tpu.memory_space<vmem>>, vector<16x128xbf16>
      tpu.vector_store %arg14[%c0_36, %c0_37], %57 {strides = array<i32>} : memref<16x128xbf16, #tpu.memory_space<vmem>>, vector<16x128xbf16>,
      %59 = vector.broadcast %39 : vector<16x1xf32> to vector<16x16xf32>
      %60 = arith.subf %25, %59 : vector<16x16xf32>
      %61 = vector.broadcast %46 : vector<16x1xf32> to vector<16x16xf32>
      %62 = arith.mulf %60, %61 : vector<16x16xf32>
      %c0_38 = arith.constant 0 : index
      %c0_39 = arith.constant 0 : index
      %63 = vector.load %arg5[%c0_38, %c0_39] : memref<1x16xf32, #tpu.memory_space<vmem>>, vector<1x16xf32>
      %64 = vector.broadcast %63 : vector<1x16xf32> to vector<16x16xf32>
      %65 = arith.mulf %62, %64 : vector<16x16xf32>
      %c0_40 = arith.constant 0 : index
      %c0_41 = arith.constant 0 : index
      %66 = vector.load %arg7[%c0_40, %c0_41] : memref<1x16xf32, #tpu.memory_space<vmem>>, vector<1x16xf32>
      %67 = vector.broadcast %66 : vector<1x16xf32> to vector<16x16xf32>
      %68 = arith.addf %65, %67 : vector<16x16xf32>
      %69 = arith.truncf %68 : vector<16x16xf32> to vector<16x16xbf16>
      %c0_42 = arith.constant 0 : index
      %c0_43 = arith.constant 0 : index
      %70 = vector.load %arg15[%c0_42, %c0_43] : memref<16x16xbf16, #tpu.memory_space<vmem>>, vector<16x16xbf16>
      tpu.vector_store %arg15[%c0_42, %c0_43], %69 {strides = array<i32>} : memref<16x16xbf16, #tpu.memory_space<vmem>>, vector<16x16xbf16>,
      %cst_44 = arith.constant 0.000000e+00 : f32
      %71 = vector.broadcast %cst_44 : f32 to vector<16x128xf32>
      %c0_45 = arith.constant 0 : index
      %c0_46 = arith.constant 0 : index
      %72 = vector.load %arg16[%c0_45, %c0_46] : memref<16x128xf32, #tpu.memory_space<vmem>>, vector<16x128xf32>
      tpu.vector_store %arg16[%c0_45, %c0_46], %71 {strides = array<i32>} : memref<16x128xf32, #tpu.memory_space<vmem>>, vector<16x128xf32>,
    } else {
    }
    %c0 = arith.constant 0 : index
    %c0_1 = arith.constant 0 : index
    %3 = vector.load %arg14[%c0, %c0_1] : memref<16x128xbf16, #tpu.memory_space<vmem>>, vector<16x128xbf16>
    %c0_2 = arith.constant 0 : index
    %c0_3 = arith.constant 0 : index
    %4 = vector.load %arg8[%c0_2, %c0_3] : memref<128x128xbf16, #tpu.memory_space<vmem>>, vector<128x128xbf16>
    %cst = arith.constant dense<0.000000e+00> : vector<16x128xf32>
    %5 = tpu.matmul %3, %4, %cst {dimension_numbers = #tpu.dot_dimension_numbers<[1], [0], [0], [1], [0, 0, 1, 1], [], []>} : vector<16x128xbf16>, vector<128x128xbf16>, vector<16x128xf32> -> vector<16x128xf32>
    %c0_4 = arith.constant 0 : index
    %c0_5 = arith.constant 0 : index
    %6 = vector.load %arg15[%c0_4, %c0_5] : memref<16x16xbf16, #tpu.memory_space<vmem>>, vector<16x16xbf16>
    %c0_6 = arith.constant 0 : index
    %c0_7 = arith.constant 0 : index
    %7 = vector.load %arg9[%c0_6, %c0_7] : memref<16x128xbf16, #tpu.memory_space<vmem>>, vector<16x128xbf16>
    %cst_8 = arith.constant dense<0.000000e+00> : vector<16x128xf32>
    %8 = tpu.matmul %6, %7, %cst_8 {dimension_numbers = #tpu.dot_dimension_numbers<[1], [0], [0], [1], [0, 0, 1, 1], [], []>} : vector<16x16xbf16>, vector<16x128xbf16>, vector<16x128xf32> -> vector<16x128xf32>
    %9 = arith.addf %5, %8 : vector<16x128xf32>
    %c0_9 = arith.constant 0 : index
    %c0_10 = arith.constant 0 : index
    %10 = vector.load %arg10[%c0_9, %c0_10] : memref<1x128xf32, #tpu.memory_space<vmem>>, vector<1x128xf32>
    %11 = vector.broadcast %10 : vector<1x128xf32> to vector<16x128xf32>
    %12 = arith.addf %9, %11 : vector<16x128xf32>
    %cst_11 = arith.constant 0.000000e+00 : f32
    %13 = vector.broadcast %cst_11 : f32 to vector<16x128xf32>
    %14 = arith.maximumf %12, %13 : vector<16x128xf32>
    %c0_12 = arith.constant 0 : index
    %c0_13 = arith.constant 0 : index
    %15 = vector.load %arg16[%c0_12, %c0_13] : memref<16x128xf32, #tpu.memory_space<vmem>>, vector<16x128xf32>
    %16 = arith.truncf %14 : vector<16x128xf32> to vector<16x128xbf16>
    %c0_14 = arith.constant 0 : index
    %c0_15 = arith.constant 0 : index
    %17 = vector.load %arg11[%c0_14, %c0_15] : memref<128x128xbf16, #tpu.memory_space<vmem>>, vector<128x128xbf16>
    %cst_16 = arith.constant dense<0.000000e+00> : vector<16x128xf32>
    %18 = tpu.matmul %16, %17, %cst_16 {dimension_numbers = #tpu.dot_dimension_numbers<[1], [0], [0], [1], [0, 0, 1, 1], [], []>} : vector<16x128xbf16>, vector<128x128xbf16>, vector<16x128xf32> -> vector<16x128xf32>
    %19 = arith.addf %15, %18 : vector<16x128xf32>
    %c0_17 = arith.constant 0 : index
    %c0_18 = arith.constant 0 : index
    %20 = vector.load %arg16[%c0_17, %c0_18] : memref<16x128xf32, #tpu.memory_space<vmem>>, vector<16x128xf32>
    tpu.vector_store %arg16[%c0_17, %c0_18], %19 {strides = array<i32>} : memref<16x128xf32, #tpu.memory_space<vmem>>, vector<16x128xf32>,
    %c0_i32_19 = arith.constant 0 : i32
    %21 = arith.cmpi eq, %arg1, %c0_i32_19 : i32
    %22 = arith.extui %21 : i1 to i32
    %c0_i32_20 = arith.constant 0 : i32
    %23 = arith.cmpi ne, %22, %c0_i32_20 : i32
    scf.if %23 {
      %c0_21 = arith.constant 0 : index
      %c0_22 = arith.constant 0 : index
      %24 = vector.load %arg2[%c0_21, %c0_22] : memref<16x128xf32, #tpu.memory_space<vmem>>, vector<16x128xf32>
      %c0_23 = arith.constant 0 : index
      %c0_24 = arith.constant 0 : index
      %25 = vector.load %arg16[%c0_23, %c0_24] : memref<16x128xf32, #tpu.memory_space<vmem>>, vector<16x128xf32>
      %c0_25 = arith.constant 0 : index
      %c0_26 = arith.constant 0 : index
      %26 = vector.load %arg12[%c0_25, %c0_26] : memref<1x128xf32, #tpu.memory_space<vmem>>, vector<1x128xf32>
      %27 = vector.broadcast %26 : vector<1x128xf32> to vector<16x128xf32>
      %28 = arith.addf %25, %27 : vector<16x128xf32>
      %29 = arith.addf %28, %24 : vector<16x128xf32>
      %c0_27 = arith.constant 0 : index
      %c0_28 = arith.constant 0 : index
      %30 = vector.load %arg13[%c0_27, %c0_28] : memref<16x128xf32, #tpu.memory_space<vmem>>, vector<16x128xf32>
      tpu.vector_store %arg13[%c0_27, %c0_28], %29 {strides = array<i32>} : memref<16x128xf32, #tpu.memory_space<vmem>>, vector<16x128xf32>,
    } else {
    }
    return
  }
  func.func @transform_0(%arg0: i32, %arg1: i32) -> (i32, i32) {
    %c0_i32 = arith.constant 0 : i32
    %c0_i32_0 = arith.constant 0 : i32
    return %arg0, %c0_i32 : i32, i32
  }
  func.func @transform_1(%arg0: i32, %arg1: i32) -> (i32, i32) {
    %c0_i32 = arith.constant 0 : i32
    %c0_i32_0 = arith.constant 0 : i32
    return %arg0, %c0_i32 : i32, i32
  }
  func.func @transform_2(%arg0: i32, %arg1: i32) -> (i32, i32) {
    %c0_i32 = arith.constant 0 : i32
    %c0_i32_0 = arith.constant 0 : i32
    %c0_i32_1 = arith.constant 0 : i32
    return %c0_i32, %c0_i32_0 : i32, i32
  }
  func.func @transform_3(%arg0: i32, %arg1: i32) -> (i32, i32) {
    %c0_i32 = arith.constant 0 : i32
    %c0_i32_0 = arith.constant 0 : i32
    %c0_i32_1 = arith.constant 0 : i32
    return %c0_i32, %c0_i32_0 : i32, i32
  }
  func.func @transform_4(%arg0: i32, %arg1: i32) -> (i32, i32) {
    %c0_i32 = arith.constant 0 : i32
    %c0_i32_0 = arith.constant 0 : i32
    %c0_i32_1 = arith.constant 0 : i32
    return %c0_i32, %c0_i32_0 : i32, i32
  }
  func.func @transform_5(%arg0: i32, %arg1: i32) -> (i32, i32) {
    %c0_i32 = arith.constant 0 : i32
    %c0_i32_0 = arith.constant 0 : i32
    %c0_i32_1 = arith.constant 0 : i32
    return %c0_i32, %c0_i32_0 : i32, i32
  }
  func.func @transform_6(%arg0: i32, %arg1: i32) -> (i32, i32) {
    %c0_i32 = arith.constant 0 : i32
    %c0_i32_0 = arith.constant 0 : i32
    return %c0_i32, %arg1 : i32, i32
  }
  func.func @transform_7(%arg0: i32, %arg1: i32) -> (i32, i32) {
    %c0_i32 = arith.constant 0 : i32
    %c0_i32_0 = arith.constant 0 : i32
    return %c0_i32, %arg1 : i32, i32
  }
  func.func @transform_8(%arg0: i32, %arg1: i32) -> (i32, i32) {
    %c0_i32 = arith.constant 0 : i32
    %c0_i32_0 = arith.constant 0 : i32
    return %c0_i32, %arg1 : i32, i32
  }
  func.func @transform_9(%arg0: i32, %arg1: i32) -> (i32, i32) {
    %c0_i32 = arith.constant 0 : i32
    %c0_i32_0 = arith.constant 0 : i32
    return %arg1, %c0_i32 : i32, i32
  }
  func.func @transform_10(%arg0: i32, %arg1: i32) -> (i32, i32) {
    %c0_i32 = arith.constant 0 : i32
    %c0_i32_0 = arith.constant 0 : i32
    %c0_i32_1 = arith.constant 0 : i32
    return %c0_i32, %c0_i32_0 : i32, i32
  }
  func.func @transform_11(%arg0: i32, %arg1: i32) -> (i32, i32) {
    %c0_i32 = arith.constant 0 : i32
    %c0_i32_0 = arith.constant 0 : i32
    return %arg0, %c0_i32 : i32, i32
  }
}

module attributes {stable_mosaic.version = 11 : i64} {
  func.func @kernel(%arg0: i32, %arg1: i32, %arg2: memref<16x128xf32, #tpu.memory_space<vmem>>, %arg3: memref<16x16xf32, #tpu.memory_space<vmem>>, %arg4: memref<1x128xf32, #tpu.memory_space<vmem>>, %arg5: memref<1x16xf32, #tpu.memory_space<vmem>>, %arg6: memref<1x128xf32, #tpu.memory_space<vmem>>, %arg7: memref<1x16xf32, #tpu.memory_space<vmem>>, %arg8: memref<128x128xbf16, #tpu.memory_space<vmem>>, %arg9: memref<16x128xbf16, #tpu.memory_space<vmem>>, %arg10: memref<1x128xf32, #tpu.memory_space<vmem>>, %arg11: memref<128x128xbf16, #tpu.memory_space<vmem>>, %arg12: memref<1x128xf32, #tpu.memory_space<vmem>>, %arg13: memref<16x128xf32, #tpu.memory_space<vmem>>, %arg14: memref<16x128xbf16, #tpu.memory_space<vmem>>, %arg15: memref<16x16xbf16, #tpu.memory_space<vmem>>, %arg16: memref<16x128xf32, #tpu.memory_space<vmem>>) attributes {dimension_semantics = [#tpu.dimension_semantics<parallel>, #tpu.dimension_semantics<arbitrary>], iteration_bounds = array<i64: 1, 1>, scalar_prefetch = 0 : i64, scratch_operands = 3 : i64, tpu.core_type = #tpu.core_type<tc>, window_params = [{transform_indices = @transform_0, window_bounds = array<i64: 16, 128>}, {transform_indices = @transform_1, window_bounds = array<i64: 16, 16>}, {pipeline_mode = #tpu.pipeline_mode<synchronous>, transform_indices = @transform_2, window_bounds = array<i64: 1, 128>}, {pipeline_mode = #tpu.pipeline_mode<synchronous>, transform_indices = @transform_3, window_bounds = array<i64: 1, 16>}, {pipeline_mode = #tpu.pipeline_mode<synchronous>, transform_indices = @transform_4, window_bounds = array<i64: 1, 128>}, {pipeline_mode = #tpu.pipeline_mode<synchronous>, transform_indices = @transform_5, window_bounds = array<i64: 1, 16>}, {transform_indices = @transform_6, window_bounds = array<i64: 128, 128>}, {transform_indices = @transform_7, window_bounds = array<i64: 16, 128>}, {transform_indices = @transform_8, window_bounds = array<i64: 1, 128>}, {transform_indices = @transform_9, window_bounds = array<i64: 128, 128>}, {pipeline_mode = #tpu.pipeline_mode<synchronous>, transform_indices = @transform_10, window_bounds = array<i64: 1, 128>}, {transform_indices = @transform_11, window_bounds = array<i64: 16, 128>}]} {
    %c0_i32 = arith.constant 0 : i32
    %0 = arith.cmpi eq, %arg1, %c0_i32 : i32
    %1 = arith.extui %0 : i1 to i32
    %c0_i32_0 = arith.constant 0 : i32
    %2 = arith.cmpi ne, %1, %c0_i32_0 : i32
    scf.if %2 {
      %c0_21 = arith.constant 0 : index
      %c0_22 = arith.constant 0 : index
      %24 = vector.load %arg2[%c0_21, %c0_22] : memref<16x128xf32, #tpu.memory_space<vmem>>, vector<16x128xf32>
      %c0_23 = arith.constant 0 : index
      %c0_24 = arith.constant 0 : index
      %25 = vector.load %arg3[%c0_23, %c0_24] : memref<16x16xf32, #tpu.memory_space<vmem>>, vector<16x16xf32>
      %cst_25 = arith.constant dense<0.000000e+00> : vector<16xf32>
      %26 = vector.multi_reduction <add>, %24, %cst_25 [1] : vector<16x128xf32> to vector<16xf32>
      %27 = vector.shape_cast %26 : vector<16xf32> to vector<16x1xf32>
      %28 = arith.mulf %24, %24 : vector<16x128xf32>
      %cst_26 = arith.constant dense<0.000000e+00> : vector<16xf32>
      %29 = vector.multi_reduction <add>, %28, %cst_26 [1] : vector<16x128xf32> to vector<16xf32>
      %30 = vector.shape_cast %29 : vector<16xf32> to vector<16x1xf32>
      %cst_27 = arith.constant dense<0.000000e+00> : vector<16xf32>
      %31 = vector.multi_reduction <add>, %25, %cst_27 [1] : vector<16x16xf32> to vector<16xf32>
      %32 = vector.shape_cast %31 : vector<16xf32> to vector<16x1xf32>
      %33 = arith.addf %27, %32 : vector<16x1xf32>
      %34 = arith.mulf %25, %25 : vector<16x16xf32>
      %cst_28 = arith.constant dense<0.000000e+00> : vector<16xf32>
      %35 = vector.multi_reduction <add>, %34, %cst_28 [1] : vector<16x16xf32> to vector<16xf32>
      %36 = vector.shape_cast %35 : vector<16xf32> to vector<16x1xf32>
      %37 = arith.addf %30, %36 : vector<16x1xf32>
      %cst_29 = arith.constant 0.020833334 : f32
      %38 = vector.broadcast %cst_29 : f32 to vector<16x1xf32>
      %39 = arith.mulf %33, %38 : vector<16x1xf32>
      %cst_30 = arith.constant 0.020833334 : f32
      %40 = vector.broadcast %cst_30 : f32 to vector<16x1xf32>
      %41 = arith.mulf %37, %40 : vector<16x1xf32>
      %42 = arith.mulf %39, %39 : vector<16x1xf32>
      %43 = arith.subf %41, %42 : vector<16x1xf32>
      %cst_31 = arith.constant 9.99999974E-6 : f32
      %44 = vector.broadcast %cst_31 : f32 to vector<16x1xf32>
      %45 = arith.addf %43, %44 : vector<16x1xf32>
      %46 = math.rsqrt %45 : vector<16x1xf32>
      %47 = vector.broadcast %39 : vector<16x1xf32> to vector<16x128xf32>
      %48 = arith.subf %24, %47 : vector<16x128xf32>
      %49 = vector.broadcast %46 : vector<16x1xf32> to vector<16x128xf32>
      %50 = arith.mulf %48, %49 : vector<16x128xf32>
      %c0_32 = arith.constant 0 : index
      %c0_33 = arith.constant 0 : index
      %51 = vector.load %arg4[%c0_32, %c0_33] : memref<1x128xf32, #tpu.memory_space<vmem>>, vector<1x128xf32>
      %52 = vector.broadcast %51 : vector<1x128xf32> to vector<16x128xf32>
      %53 = arith.mulf %50, %52 : vector<16x128xf32>
      %c0_34 = arith.constant 0 : index
      %c0_35 = arith.constant 0 : index
      %54 = vector.load %arg6[%c0_34, %c0_35] : memref<1x128xf32, #tpu.memory_space<vmem>>, vector<1x128xf32>
      %55 = vector.broadcast %54 : vector<1x128xf32> to vector<16x128xf32>
      %56 = arith.addf %53, %55 : vector<16x128xf32>
      %57 = arith.truncf %56 : vector<16x128xf32> to vector<16x128xbf16>
      %c0_36 = arith.constant 0 : index
      %c0_37 = arith.constant 0 : index
      %58 = vector.load %arg14[%c0_36, %c0_37] : memref<16x128xbf16, #tpu.memory_space<vmem>>, vector<16x128xbf16>
      tpu.vector_store %arg14[%c0_36, %c0_37], %57 {strides = array<i32>} : memref<16x128xbf16, #tpu.memory_space<vmem>>, vector<16x128xbf16>,
      %59 = vector.broadcast %39 : vector<16x1xf32> to vector<16x16xf32>
      %60 = arith.subf %25, %59 : vector<16x16xf32>
      %61 = vector.broadcast %46 : vector<16x1xf32> to vector<16x16xf32>
      %62 = arith.mulf %60, %61 : vector<16x16xf32>
      %c0_38 = arith.constant 0 : index
      %c0_39 = arith.constant 0 : index
      %63 = vector.load %arg5[%c0_38, %c0_39] : memref<1x16xf32, #tpu.memory_space<vmem>>, vector<1x16xf32>
      %64 = vector.broadcast %63 : vector<1x16xf32> to vector<16x16xf32>
      %65 = arith.mulf %62, %64 : vector<16x16xf32>
      %c0_40 = arith.constant 0 : index
      %c0_41 = arith.constant 0 : index
      %66 = vector.load %arg7[%c0_40, %c0_41] : memref<1x16xf32, #tpu.memory_space<vmem>>, vector<1x16xf32>
      %67 = vector.broadcast %66 : vector<1x16xf32> to vector<16x16xf32>
      %68 = arith.addf %65, %67 : vector<16x16xf32>
      %69 = arith.truncf %68 : vector<16x16xf32> to vector<16x16xbf16>
      %c0_42 = arith.constant 0 : index
      %c0_43 = arith.constant 0 : index
      %70 = vector.load %arg15[%c0_42, %c0_43] : memref<16x16xbf16, #tpu.memory_space<vmem>>, vector<16x16xbf16>
      tpu.vector_store %arg15[%c0_42, %c0_43], %69 {strides = array<i32>} : memref<16x16xbf16, #tpu.memory_space<vmem>>, vector<16x16xbf16>,
      %cst_44 = arith.constant 0.000000e+00 : f32
      %71 = vector.broadcast %cst_44 : f32 to vector<16x128xf32>
      %c0_45 = arith.constant 0 : index
      %c0_46 = arith.constant 0 : index
      %72 = vector.load %arg16[%c0_45, %c0_46] : memref<16x128xf32, #tpu.memory_space<vmem>>, vector<16x128xf32>
      tpu.vector_store %arg16[%c0_45, %c0_46], %71 {strides = array<i32>} : memref<16x128xf32, #tpu.memory_space<vmem>>, vector<16x128xf32>,
    } else {
    }
    %c0 = arith.constant 0 : index
    %c0_1 = arith.constant 0 : index
    %3 = vector.load %arg14[%c0, %c0_1] : memref<16x128xbf16, #tpu.memory_space<vmem>>, vector<16x128xbf16>
    %c0_2 = arith.constant 0 : index
    %c0_3 = arith.constant 0 : index
    %4 = vector.load %arg8[%c0_2, %c0_3] : memref<128x128xbf16, #tpu.memory_space<vmem>>, vector<128x128xbf16>
    %cst = arith.constant dense<0.000000e+00> : vector<16x128xf32>
    %5 = tpu.matmul %3, %4, %cst {dimension_numbers = #tpu.dot_dimension_numbers<[1], [0], [0], [1], [0, 0, 1, 1], [], []>} : vector<16x128xbf16>, vector<128x128xbf16>, vector<16x128xf32> -> vector<16x128xf32>
    %c0_4 = arith.constant 0 : index
    %c0_5 = arith.constant 0 : index
    %6 = vector.load %arg15[%c0_4, %c0_5] : memref<16x16xbf16, #tpu.memory_space<vmem>>, vector<16x16xbf16>
    %c0_6 = arith.constant 0 : index
    %c0_7 = arith.constant 0 : index
    %7 = vector.load %arg9[%c0_6, %c0_7] : memref<16x128xbf16, #tpu.memory_space<vmem>>, vector<16x128xbf16>
    %cst_8 = arith.constant dense<0.000000e+00> : vector<16x128xf32>
    %8 = tpu.matmul %6, %7, %cst_8 {dimension_numbers = #tpu.dot_dimension_numbers<[1], [0], [0], [1], [0, 0, 1, 1], [], []>} : vector<16x16xbf16>, vector<16x128xbf16>, vector<16x128xf32> -> vector<16x128xf32>
    %9 = arith.addf %5, %8 : vector<16x128xf32>
    %c0_9 = arith.constant 0 : index
    %c0_10 = arith.constant 0 : index
    %10 = vector.load %arg10[%c0_9, %c0_10] : memref<1x128xf32, #tpu.memory_space<vmem>>, vector<1x128xf32>
    %11 = vector.broadcast %10 : vector<1x128xf32> to vector<16x128xf32>
    %12 = arith.addf %9, %11 : vector<16x128xf32>
    %cst_11 = arith.constant 0.000000e+00 : f32
    %13 = vector.broadcast %cst_11 : f32 to vector<16x128xf32>
    %14 = arith.maximumf %12, %13 : vector<16x128xf32>
    %c0_12 = arith.constant 0 : index
    %c0_13 = arith.constant 0 : index
    %15 = vector.load %arg16[%c0_12, %c0_13] : memref<16x128xf32, #tpu.memory_space<vmem>>, vector<16x128xf32>
    %16 = arith.truncf %14 : vector<16x128xf32> to vector<16x128xbf16>
    %c0_14 = arith.constant 0 : index
    %c0_15 = arith.constant 0 : index
    %17 = vector.load %arg11[%c0_14, %c0_15] : memref<128x128xbf16, #tpu.memory_space<vmem>>, vector<128x128xbf16>
    %cst_16 = arith.constant dense<0.000000e+00> : vector<16x128xf32>
    %18 = tpu.matmul %16, %17, %cst_16 {dimension_numbers = #tpu.dot_dimension_numbers<[1], [0], [0], [1], [0, 0, 1, 1], [], []>} : vector<16x128xbf16>, vector<128x128xbf16>, vector<16x128xf32> -> vector<16x128xf32>
    %19 = arith.addf %15, %18 : vector<16x128xf32>
    %c0_17 = arith.constant 0 : index
    %c0_18 = arith.constant 0 : index
    %20 = vector.load %arg16[%c0_17, %c0_18] : memref<16x128xf32, #tpu.memory_space<vmem>>, vector<16x128xf32>
    tpu.vector_store %arg16[%c0_17, %c0_18], %19 {strides = array<i32>} : memref<16x128xf32, #tpu.memory_space<vmem>>, vector<16x128xf32>,
    %c0_i32_19 = arith.constant 0 : i32
    %21 = arith.cmpi eq, %arg1, %c0_i32_19 : i32
    %22 = arith.extui %21 : i1 to i32
    %c0_i32_20 = arith.constant 0 : i32
    %23 = arith.cmpi ne, %22, %c0_i32_20 : i32
    scf.if %23 {
      %c0_21 = arith.constant 0 : index
      %c0_22 = arith.constant 0 : index
      %24 = vector.load %arg2[%c0_21, %c0_22] : memref<16x128xf32, #tpu.memory_space<vmem>>, vector<16x128xf32>
      %c0_23 = arith.constant 0 : index
      %c0_24 = arith.constant 0 : index
      %25 = vector.load %arg16[%c0_23, %c0_24] : memref<16x128xf32, #tpu.memory_space<vmem>>, vector<16x128xf32>
      %c0_25 = arith.constant 0 : index
      %c0_26 = arith.constant 0 : index
      %26 = vector.load %arg12[%c0_25, %c0_26] : memref<1x128xf32, #tpu.memory_space<vmem>>, vector<1x128xf32>
      %27 = vector.broadcast %26 : vector<1x128xf32> to vector<16x128xf32>
      %28 = arith.addf %25, %27 : vector<16x128xf32>
      %29 = arith.addf %28, %24 : vector<16x128xf32>
      %c0_27 = arith.constant 0 : index
      %c0_28 = arith.constant 0 : index
      %30 = vector.load %arg13[%c0_27, %c0_28] : memref<16x128xf32, #tpu.memory_space<vmem>>, vector<16x128xf32>
      tpu.vector_store %arg13[%c0_27, %c0_28], %29 {strides = array<i32>} : memref<16x128xf32, #tpu.memory_space<vmem>>, vector<16x128xf32>,
    } else {
    }
    return
  }
  func.func @transform_0(%arg0: i32, %arg1: i32) -> (i32, i32) {
    %c0_i32 = arith.constant 0 : i32
    %c0_i32_0 = arith.constant 0 : i32
    return %arg0, %c0_i32 : i32, i32
  }
  func.func @transform_1(%arg0: i32, %arg1: i32) -> (i32, i32) {
    %c0_i32 = arith.constant 0 : i32
    %c0_i32_0 = arith.constant 0 : i32
    return %arg0, %c0_i32 : i32, i32
  }
  func.func @transform_2(%arg0: i32, %arg1: i32) -> (i32, i32) {
    %c0_i32 = arith.constant 0 : i32
    %c0_i32_0 = arith.constant 0 : i32
    %c0_i32_1 = arith.constant 0 : i32
    return %c0_i32, %c0_i32_0 : i32, i32
  }
  func.func @transform_3(%arg0: i32, %arg1: i32) -> (i32, i32) {
    %c0_i32 = arith.constant 0 : i32
    %c0_i32_0 = arith.constant 0 : i32
    %c0_i32_1 = arith.constant 0 : i32
    return %c0_i32, %c0_i32_0 : i32, i32
  }
  func.func @transform_4(%arg0: i32, %arg1: i32) -> (i32, i32) {
    %c0_i32 = arith.constant 0 : i32
    %c0_i32_0 = arith.constant 0 : i32
    %c0_i32_1 = arith.constant 0 : i32
    return %c0_i32, %c0_i32_0 : i32, i32
  }
  func.func @transform_5(%arg0: i32, %arg1: i32) -> (i32, i32) {
    %c0_i32 = arith.constant 0 : i32
    %c0_i32_0 = arith.constant 0 : i32
    %c0_i32_1 = arith.constant 0 : i32
    return %c0_i32, %c0_i32_0 : i32, i32
  }
  func.func @transform_6(%arg0: i32, %arg1: i32) -> (i32, i32) {
    %c0_i32 = arith.constant 0 : i32
    %c0_i32_0 = arith.constant 0 : i32
    return %c0_i32, %arg1 : i32, i32
  }
  func.func @transform_7(%arg0: i32, %arg1: i32) -> (i32, i32) {
    %c0_i32 = arith.constant 0 : i32
    %c0_i32_0 = arith.constant 0 : i32
    return %c0_i32, %arg1 : i32, i32
  }
  func.func @transform_8(%arg0: i32, %arg1: i32) -> (i32, i32) {
    %c0_i32 = arith.constant 0 : i32
    %c0_i32_0 = arith.constant 0 : i32
    return %c0_i32, %arg1 : i32, i32
  }
  func.func @transform_9(%arg0: i32, %arg1: i32) -> (i32, i32) {
    %c0_i32 = arith.constant 0 : i32
    %c0_i32_0 = arith.constant 0 : i32
    return %arg1, %c0_i32 : i32, i32
  }
  func.func @transform_10(%arg0: i32, %arg1: i32) -> (i32, i32) {
    %c0_i32 = arith.constant 0 : i32
    %c0_i32_0 = arith.constant 0 : i32
    %c0_i32_1 = arith.constant 0 : i32
    return %c0_i32, %c0_i32_0 : i32, i32
  }
  func.func @transform_11(%arg0: i32, %arg1: i32) -> (i32, i32) {
    %c0_i32 = arith.constant 0 : i32
    %c0_i32_0 = arith.constant 0 : i32
    return %arg0, %c0_i32 : i32, i32
  }
}

</mosaic_0001>

<bundles_post_ra>
// kernel: tpu_custom_call.1
= control target key start
LH: loop header
LB: loop body
LE: loop exit
PB: predicated region body
PF: predicated region fallthrough
CT: control target
= control target key end

     0   :  { %16 = vsyncpa [#allocation6], 0  ;;  %s979_s0 = inlined_call_operand.hbm [shape: f32[16,128], index: 0, kind: input, shape index: {}]   ;;  %s980_s1 = inlined_call_operand.hbm [shape: f32[16,16], index: 1, kind: input, shape index: {}]   ;;  %s981_s2 = inlined_call_operand.vmem [shape: f32[1,128], index: 2, kind: input, shape index: {}]   ;;  %s982_s3 = inlined_call_operand.vmem [shape: f32[1,16], index: 3, kind: input, shape index: {}]   ;;  %s983_s4 = inlined_call_operand.vmem [shape: f32[1,128], index: 4, kind: input, shape index: {}]   ;;  %s984_s5 = inlined_call_operand.vmem [shape: f32[1,16], index: 5, kind: input, shape index: {}]   ;;  %s985_s6 = inlined_call_operand.hbm [shape: bf16[128,128], index: 6, kind: input, shape index: {}]   ;;  %s986_s7 = inlined_call_operand.vmem [shape: bf16[16,128], index: 7, kind: input, shape index: {}]   ;;  %s987_s8 = inlined_call_operand.vmem [shape: f32[1,128], index: 8, kind: input, shape index: {}]   ;;  %s988_s9 = inlined_call_operand.hbm [shape: bf16[128,128], index: 9, kind: input, shape index: {}]   ;;  %s989_s10 = inlined_call_operand.vmem [shape: f32[1,128], index: 10, kind: input, shape index: {}]   ;;  %s990_s11 = inlined_call_operand.hbm [shape: f32[16,128], index: 11, kind: output, shape index: {}]  }
   0x1   :  { %17 = vsyncpa [#allocation9], 0 }
   0x2   :  { %18 = vsyncpa [#allocation12], 0 }
   0x3   :  { %19 = vsyncpa [#allocation7], 0  ;;  %s756_s17 = smov [#allocation8]   ;;  %s757_s19 = smov [#allocation5]  }
   0x4   :  { %s37_s18 = sshll.u32 %s756_s17, 4  ;;  %s25_s20 = sshll.u32 %s757_s19, 4  ;;  %s38_s18 = int_to_ptr.vmem [resolvable:$true] %s37_s18  ;;  %s827_s20 = int_to_ptr.vmem [resolvable:$true] %s25_s20 }
   0x5   :  { %s638_s23 = scalar_lea.hbm %s980_s1, 256 }
   0x6   :  { %p639_p0 = scmp.ne.s32.totalorder %s980_s1, %s638_s23  ;;  %p642_p1 = scmp.lt.u32.totalorder %s638_s23, %s980_s1 }
   0x8   :  { %p644_p2 = pnand %p642_p1, %p639_p0 }
   0xa   :  { %647 = shalt.err (!%p644_p2)
}
   0xb   :  { %s648_s28 = scalar_lea.vmem %s38_s18, 256  ;;  %p653_p4 = scmp.lt.s32.totalorder %s38_s18, %s38_s18 }
   0xc   :  { %p649_p3 = scmp.ne.s32.totalorder %s38_s18, %s648_s28  ;;  %p654_p5 = scmp.lt.s32.totalorder %s648_s28, %s648_s28 }
   0xe   :  { %p655_p6 = por %p654_p5, %p653_p4 }
  0x10   :  { %p656_p7 = pnand %p655_p6, %p649_p3 }
  0x12   :  { %659 = shalt.err (!%p656_p7)
}
  0x13   :  { %s758_s29 = smov 128   ;;  %s759_s30 = smov 8  }
  0x14   :  { %43 = dma.hbm_to_vmem [thread:$0]  %s980_s1, 256, %s38_s18, [#allocation9], %s758_s29, %s758_s29, %s759_s30  }
  0x15   :  { %s660_s16 = scalar_lea.hbm %s979_s0, 256 }
  0x16   :  { %p661_p8 = scmp.ne.s32.totalorder %s979_s0, %s660_s16  ;;  %p664_p9 = scmp.lt.u32.totalorder %s660_s16, %s979_s0 }
  0x18   :  { %p666_p10 = pnand %p664_p9, %p661_p8 }
  0x1a   :  { %669 = shalt.err (!%p666_p10)
}
  0x1b   :  { %s670_s23 = scalar_lea.vmem %s827_s20, 256  ;;  %p675_p12 = scmp.lt.s32.totalorder %s827_s20, %s827_s20 }
  0x1c   :  { %p671_p11 = scmp.ne.s32.totalorder %s827_s20, %s670_s23  ;;  %p676_p13 = scmp.lt.s32.totalorder %s670_s23, %s670_s23 }
  0x1e   :  { %p677_p0 = por %p676_p13, %p675_p12 }
  0x20   :  { %p678_p1 = pnand %p677_p0, %p671_p11 }
  0x22   :  { %681 = shalt.err (!%p678_p1)
}
  0x23   :  { %31 = dma.hbm_to_vmem [thread:$0]  %s979_s0, 256, %s827_s20, [#allocation6], %s758_s29, %s758_s29, %s759_s30  }
  0x24   :  { %s760_s24 = smov [#allocation10]   ;;  %s682_s28 = scalar_lea.hbm %s985_s6, 1024 }
  0x25   :  { %s57_s25 = sshll.u32 %s760_s24, 4  ;;  %p683_p2 = scmp.ne.s32.totalorder %s985_s6, %s682_s28  ;;  %s58_s25 = int_to_ptr.vmem [resolvable:$true] %s57_s25 }
  0x26   :  { %p686_p3 = scmp.lt.u32.totalorder %s682_s28, %s985_s6 }
  0x28   :  { %p688_p4 = pnand %p686_p3, %p683_p2 }
  0x2a   :  { %691 = shalt.err (!%p688_p4)
}
  0x2b   :  { %s692_s16 = scalar_lea.vmem %s58_s25, 1024  ;;  %p697_p6 = scmp.lt.s32.totalorder %s58_s25, %s58_s25 }
  0x2c   :  { %p693_p5 = scmp.ne.s32.totalorder %s58_s25, %s692_s16  ;;  %p698_p7 = scmp.lt.s32.totalorder %s692_s16, %s692_s16 }
  0x2e   :  { %p699_p8 = por %p698_p7, %p697_p6 }
  0x30   :  { %p700_p9 = pnand %p699_p8, %p693_p5 }
  0x32   :  { %703 = shalt.err (!%p700_p9)
}
  0x33   :  { %s761_s0 = smov 64   ;;  %s762_s20 = smov 4  }
  0x34   :  { %63 = dma.hbm_to_vmem [thread:$0]  %s985_s6, 1024, %s58_s25, [#allocation9], %s761_s0, %s761_s0, %s762_s20  }
  0x35   :  { %s763_s21 = smov [#allocation11]   ;;  %s704_s18 = scalar_lea.hbm %s988_s9, 1024 }
  0x36   :  { %s73_s22 = sshll.u32 %s763_s21, 4  ;;  %p705_p10 = scmp.ne.s32.totalorder %s988_s9, %s704_s18  ;;  %s74_s22 = int_to_ptr.vmem [resolvable:$true] %s73_s22 }
  0x37   :  { %p708_p11 = scmp.lt.u32.totalorder %s704_s18, %s988_s9 }
  0x39   :  { %p710_p12 = pnand %p708_p11, %p705_p10 }
  0x3b   :  { %713 = shalt.err (!%p710_p12)
}
  0x3c   :  { %s714_s12 = scalar_lea.vmem %s74_s22, 1024  ;;  %p719_p0 = scmp.lt.s32.totalorder %s74_s22, %s74_s22 }
  0x3d   :  { %p715_p13 = scmp.ne.s32.totalorder %s74_s22, %s714_s12  ;;  %p720_p1 = scmp.lt.s32.totalorder %s714_s12, %s714_s12 }
  0x3f   :  { %p721_p2 = por %p720_p1, %p719_p0 }
  0x41   :  { %p722_p3 = pnand %p721_p2, %p715_p13 }
  0x43   :  { %725 = shalt.err (!%p722_p3)
}
  0x44   :  { %79 = dma.hbm_to_vmem [thread:$0]  %s988_s9, 1024, %s74_s22, [#allocation12], %s761_s0, %s761_s0, %s762_s20  }
  0x45   :  { %748 = dma.done.wait [#allocation6], 256  }
  0x46   :  { %749 = vsyncadd [#allocation6], 4294967040 }
  0x47   :  { %750 = dma.done.wait [#allocation9], 1280  }
  0x48   :  { %751 = vsyncadd [#allocation9], 4294966016 }
  0x49   :  { %752 = dma.done.wait [#allocation12], 1024  }
  0x4a   :  { %753 = vsyncadd [#allocation12], 4294966272  ;;  %vm113_vm0 = vcmask 130048   ;;  %v888_v0 = vld [vmem:[#allocation5] sm:$0xff]  ;;  %v890_v1 = vld [vmem:[#allocation8] sm:$0xff]  ;;  %v764_v13 = vmov 0.0  }
  0x4b   :  { %103 = vadd.xlane.f32.xlu0 %v888_v0  ;;  %v114_v2 = vsel %vm113_vm0, %v890_v1, 0.0  ;;  %v895_v3 = vld [vmem:[#allocation8 + $0x8] sm:$0xff]  ;;  %v122_v4 = vmul.f32 %v890_v1, %v890_v1  ;;  %v899_v5 = vld [vmem:[#allocation5 + $0x8] sm:$0xff]  ;;  %v107_v10 = vmul.f32 %v888_v0, %v888_v0  ;;  %v617_v12 = vld [vmem:[#allocation10] sm:$0xff]   ;;  %566 = vmatprep.subr.bf16.mxu1 %v764_v13  ;;  %vm765_vm1 = vmmov 0  }
  0x4c   :  { %115 = vadd.xlane.f32.xlu1 %v114_v2  ;;  %v123_v6 = vmul.f32 %v895_v3, %v895_v3  ;;  %v117_v7 = vsel %vm113_vm0, %v895_v3, 0.0  ;;  %v108_v11 = vmul.f32 %v899_v5, %v899_v5  ;;  %560 = vmatprep.subr.bf16.mxu0 %v764_v13  ;;  %v618_v14 = vld [vmem:[#allocation10 + $0x8] sm:$0xff]   ;;  %v619_v15 = vld [vmem:[#allocation10 + $0x10] sm:$0xff]   ;;  %v620_v16 = vld [vmem:[#allocation10 + $0x18] sm:$0xff]  }
  0x4d   :  { %v124_v8 = vsel %vm113_vm0, %v122_v4, 0.0  ;;  %567 = vmatpush3.bf16.msra.mxu1 %v617_v12  ;;  %v621_v17 = vld [vmem:[#allocation10 + $0x20] sm:$0xff]   ;;  %v622_v18 = vld [vmem:[#allocation10 + $0x28] sm:$0xff]   ;;  %v623_v19 = vld [vmem:[#allocation10 + $0x30] sm:$0xff]   ;;  %582 = vmatprep.mubr.msk.bf16.mxu1 %vm765_vm1, %v764_v13 }
  0x4e   :  { %v127_v9 = vsel %vm113_vm0, %v123_v6, 0.0  ;;  %568 = vmatprep.subr.bf16.mxu1 %v764_v13  ;;  %v624_v20 = vld [vmem:[#allocation10 + $0x38] sm:$0xff]   ;;  %562 = vmatprep.mubr.msk.bf16.mxu0 %vm765_vm1, %v764_v13  ;;  %v626_v6 = vld [vmem:[#allocation11] sm:$0xff]   ;;  %v631_v12 = vld [vmem:[#allocation11 + $0x28] sm:$0xff]  }
  0x4f   :  { %105 = vadd.xlane.f32.xlu0 %v899_v5  ;;  %v625_v21 = vld [vmem:[%s986_s7] sm:$0xff]  }
  0x50   :  { %118 = vadd.xlane.f32.xlu1 %v117_v7  ;;  %561 = vmatpush3.bf16.msra.mxu0 %v625_v21  ;;  %v518_v49 = vld [vmem:[%s982_s3] ss:$0 sm:$0xff] }
  0x51   :  { %569 = vmatpush3.bf16.msra.mxu1 %v618_v14  ;;  %586 = vmatprep.subr.bf16.mxu0 %v764_v13  ;;  %v516_v50 = vld [vmem:[%s981_s2] ss:$0 sm:$0xff]  ;;  %v632_v14 = vld [vmem:[#allocation11 + $0x30] sm:$0xff]  }
  0x52   :  { %570 = vmatprep.subr.bf16.mxu1 %v764_v13  ;;  %v519_v54 = vld [vmem:[%s984_s5] ss:$0 sm:$0xff] }
  0x53   :  { %109 = vadd.xlane.f32.xlu0 %v107_v10  ;;  %v517_v57 = vld [vmem:[%s983_s4] ss:$0 sm:$0xff] }
  0x54   :  { %111 = vadd.xlane.f32.xlu1 %v108_v11  ;;  %v629_v10 = vld [vmem:[#allocation11 + $0x18] sm:$0xff]   ;;  %v630_v11 = vld [vmem:[#allocation11 + $0x20] sm:$0xff]  }
  0x55   :  { %571 = vmatpush3.bf16.msra.mxu1 %v619_v15  ;;  %v633_v15 = vld [vmem:[#allocation11 + $0x38] sm:$0xff]  }
  0x56   :  { %572 = vmatprep.subr.bf16.mxu1 %v764_v13  ;;  %v530_v21 = vld [vmem:[%s987_s8] ss:$0 sm:$0xff]  ;;  %s766_s8 = smov [#allocation13]  }
  0x57   :  { %125 = vadd.xlane.f32.xlu0 %v124_v8  ;;  %v627_v8 = vld [vmem:[#allocation11 + $0x8] sm:$0xff]   ;;  %s502_s21 = sshll.u32 %s766_s8, 4  ;;  %s503_s21 = int_to_ptr.vmem [resolvable:$true] %s502_s21 }
  0x58   :  { %128 = vadd.xlane.f32.xlu1 %v127_v9  ;;  %v628_v9 = vld [vmem:[#allocation11 + $0x10] sm:$0xff]   ;;  %s726_s22 = scalar_lea.vmem %s503_s21, 256  ;;  %p731_p5 = scmp.lt.s32.totalorder %s503_s21, %s503_s21 }
  0x59   :  { %573 = vmatpush3.bf16.msra.mxu1 %v620_v16  ;;  %p727_p4 = scmp.ne.s32.totalorder %s503_s21, %s726_s22  ;;  %p732_p6 = scmp.lt.s32.totalorder %s726_s22, %s726_s22 }
  0x5a   :  { %574 = vmatprep.subr.bf16.mxu1 %v764_v13 }
  0x5b   :  { %p733_p7 = por %p732_p6, %p731_p5 }
  0x5d   :  { %575 = vmatpush3.bf16.msra.mxu1 %v621_v17  ;;  %p734_p8 = pnand %p733_p7, %p727_p4 }
  0x5e   :  { %576 = vmatprep.subr.bf16.mxu1 %v764_v13 }
  0x61   :  { %577 = vmatpush3.bf16.msra.mxu1 %v622_v18 }
  0x62   :  { %578 = vmatprep.subr.bf16.mxu1 %v764_v13 }
  0x65   :  { %579 = vmatpush3.bf16.msra.mxu1 %v623_v19 }
  0x66   :  { %580 = vmatprep.subr.bf16.mxu1 %v764_v13 }
  0x69   :  { %581 = vmatpush3.bf16.msra.mxu1 %v624_v20 }
  0xd8   :  { %v104_v22 = vpop.xlane.xlu0 %103 }
  0xd9   :  { %v116_v23 = vpop.xlane.xlu1 %115 }
  0xda   :  { %v120_v26 = vadd.f32 %v116_v23, %v104_v22 }
  0xdc   :  { %v106_v24 = vpop.xlane.xlu0 %105  ;;  %v132_v30 = vmul.f32 0.020833334, %v120_v26 }
  0xdd   :  { %v119_v25 = vpop.xlane.xlu1 %118 }
  0xde   :  { %v121_v27 = vadd.f32 %v119_v25, %v106_v24  ;;  %v136_v36 = vmul.f32 %v132_v30, %v132_v30  ;;  %v144_v44 = vsub.f32 %v888_v0, %v132_v30  ;;  %v168_v45 = vsub.f32 %v890_v1, %v132_v30 }
  0xe0   :  { %v110_v28 = vpop.xlane.xlu0 %109  ;;  %v133_v31 = vmul.f32 0.020833334, %v121_v27 }
  0xe1   :  { %v112_v29 = vpop.xlane.xlu1 %111 }
  0xe2   :  { %v137_v39 = vmul.f32 %v133_v31, %v133_v31  ;;  %v145_v47 = vsub.f32 %v899_v5, %v133_v31  ;;  %v169_v48 = vsub.f32 %v895_v3, %v133_v31  ;;  %v539_v31 = vld [vmem:[%s989_s10] ss:$0 sm:$0xff] }
  0xe4   :  { %v126_v32 = vpop.xlane.xlu0 %125 }
  0xe5   :  { %v130_v33 = vadd.f32 %v126_v32, %v110_v28  ;;  %v129_v34 = vpop.xlane.xlu1 %128 }
  0xe6   :  { %v131_v35 = vadd.f32 %v129_v34, %v112_v29 }
  0xe7   :  { %v134_v37 = vmul.f32 0.020833334, %v130_v33 }
  0xe8   :  { %v135_v38 = vmul.f32 0.020833334, %v131_v35 }
  0xe9   :  { %v138_v40 = vsub.f32 %v134_v37, %v136_v36 }
  0xea   :  { %v139_v41 = vsub.f32 %v135_v38, %v137_v39 }
  0xeb   :  { %v140_v42 = vadd.f32 1e-05, %v138_v40 }
  0xec   :  { %v141_v43 = vadd.f32 1e-05, %v139_v41 }
  0xed   :  { %634 = vrsqrt.f32 %v140_v42 }
  0xee   :  { %636 = vrsqrt.f32 %v141_v43 }
  0xf7   :  { %v635_v46 = vpop.eup %634 }
  0xf8   :  { %v637_v51 = vpop.eup %636  ;;  %v170_v52 = vmul.f32 %v635_v46, %v168_v45  ;;  %v146_v53 = vmul.f32 %v635_v46, %v144_v44 }
  0xf9   :  { %v171_v55 = vmul.f32 %v637_v51, %v169_v48  ;;  %v147_v56 = vmul.f32 %v637_v51, %v145_v47 }
  0xfa   :  { %v179_v58 = vmul.f32 %v518_v49, %v170_v52  ;;  %v155_v59 = vmul.f32 %v516_v50, %v146_v53 }
  0xfb   :  { %v180_v60 = vmul.f32 %v518_v49, %v171_v55  ;;  %v156_v61 = vmul.f32 %v516_v50, %v147_v56 }
  0xfc   :  { %v188_v62 = vadd.f32 %v519_v54, %v179_v58  ;;  %v164_v63 = vadd.f32 %v517_v57, %v155_v59 }
  0xfd   :  { %v189_v1 = vadd.f32 %v519_v54, %v180_v60  ;;  %v165_v2 = vadd.f32 %v517_v57, %v156_v61 }
  0xff   :  { %v190_v3 = vpack.c.bf16 %v189_v1, %v188_v62  ;;  %v166_v4 = vpack.c.bf16 %v165_v2, %v164_v63 }
 0x101   :  { %191 = vst.msk [vmem:[#allocation3] sm:$0xff] %vm113_vm0, %v190_v3  ;;  %583 = vmatmul.mubr.bf16.vlgmr.msra.gmra.mrb[0].mxu1 %v166_v4 }
 0x108   :  { %v211_v7 = vld [vmem:[#allocation3] sm:$0xff] }
 0x109   :  { %563 = vmatmul.mubr.msk.bf16.vlgmr.msra.gmra.mrb[0].mxu0 %vm113_vm0, %v211_v7 }
 0x10a   :  { %587 = vmatpush3.bf16.msra.mxu0 %v626_v6  ;;  %602 = vmatprep.mubr.msk.bf16.mxu0 %vm765_vm1, %v764_v13 }
 0x10b   :  { %588 = vmatprep.subr.bf16.mxu0 %v764_v13 }
 0x10e   :  { %589 = vmatpush3.bf16.msra.mxu0 %v627_v8 }
 0x10f   :  { %590 = vmatprep.subr.bf16.mxu0 %v764_v13 }
 0x112   :  { %591 = vmatpush3.bf16.msra.mxu0 %v628_v9 }
 0x113   :  { %592 = vmatprep.subr.bf16.mxu0 %v764_v13 }
 0x116   :  { %593 = vmatpush3.bf16.msra.mxu0 %v629_v10 }
 0x117   :  { %594 = vmatprep.subr.bf16.mxu0 %v764_v13 }
 0x11a   :  { %595 = vmatpush3.bf16.msra.mxu0 %v630_v11 }
 0x11b   :  { %596 = vmatprep.subr.bf16.mxu0 %v764_v13 }
 0x11e   :  { %597 = vmatpush3.bf16.msra.mxu0 %v631_v12 }
 0x11f   :  { %598 = vmatprep.subr.bf16.mxu0 %v764_v13 }
 0x122   :  { %599 = vmatpush3.bf16.msra.mxu0 %v632_v14 }
 0x123   :  { %600 = vmatprep.subr.bf16.mxu0 %v764_v13 }
 0x126   :  { %601 = vmatpush3.bf16.msra.mxu0 %v633_v15 }
 0x1d4   :  { %v347_v16 = vpop.f32.mrb[0].mxu1 }
 0x1d5   :  { %v584_v17 = vpop.f32.mrb[1].mxu1 }
 0x1d6   :  { %v350_v18 = vpop.f32.mrb[2].mxu1 }
 0x1d7   :  { %v585_v19 = vpop.f32.mrb[3].mxu1 }
 0x1dc   :  { %v258_v20 = vpop.f32.mrb[0].mxu0 }
 0x1dd   :  { %v348_v22 = vadd.f32 %v347_v16, %v258_v20  ;;  %v564_v23 = vpop.f32.mrb[1].mxu0 }
 0x1de   :  { %v261_v24 = vpop.f32.mrb[2].mxu0 }
 0x1df   :  { %v361_v25 = vadd.f32 %v530_v21, %v348_v22  ;;  %v351_v26 = vadd.f32 %v350_v18, %v261_v24  ;;  %v565_v27 = vpop.f32.mrb[3].mxu0 }
 0x1e1   :  { %v362_v28 = vadd.f32 %v530_v21, %v351_v26  ;;  %v363_v29 = vmax.f32 %v361_v25, 0.0 }
 0x1e3   :  { %v364_v13 = vmax.f32 %v362_v28, 0.0 }
 0x1e5   :  { %v367_v30 = vpack.c.bf16 %v364_v13, %v363_v29 }
 0x1e7   :  { %603 = vmatmul.mubr.bf16.vlgmr.msra.gmra.mrb[4].mxu0 %v367_v30 }
 0x2ba   :  { %v466_v32 = vpop.f32.mrb[4].mxu0 }
 0x2bb   :  { %v491_v33 = vadd.f32 %v539_v31, %v466_v32  ;;  %v604_v34 = vpop.f32.mrb[5].mxu0 }
 0x2bc   :  { %v469_v35 = vpop.f32.mrb[6].mxu0 }
 0x2bd   :  { %v493_v36 = vadd.f32 %v491_v33, %v888_v0  ;;  %v492_v37 = vadd.f32 %v539_v31, %v469_v35  ;;  %v605_v38 = vpop.f32.mrb[7].mxu0 }
 0x2bf   :  { %495 = vst [vmem:[#allocation13] sm:$0xff] %v493_v36  ;;  %v494_v39 = vadd.f32 %v492_v37, %v899_v5 }
 0x2c1   :  { %496 = vst [vmem:[#allocation13 + $0x8] sm:$0xff] %v494_v39 }
 0x2c2   :  { %737 = shalt.err (!%p734_p8)
}
 0x2c3   :  { %s738_s1 = scalar_lea.hbm %s990_s11, 256 }
 0x2c4   :  { %p739_p9 = scmp.ne.s32.totalorder %s990_s11, %s738_s1  ;;  %p742_p10 = scmp.lt.u32.totalorder %s738_s1, %s990_s11 }
 0x2c6   :  { %p744_p11 = pnand %p742_p10, %p739_p9 }
 0x2c8   :  { %747 = shalt.err (!%p744_p11)
}
 0x2c9   :  { %508 = dma.vmem_to_hbm [thread:$0]  %s503_s21, 256, %s990_s11, [#allocation7], %s758_s29, %s758_s29, %s759_s30  }
 0x2ca   :  { %754 = dma.done.wait [#allocation7], 256  }
 0x2cb   :  { %755 = vsyncadd [#allocation7], 4294967040 }
 0x2cc   :  { %512 = vsyncpa [#allocation6], 1 }
 0x2cd   :  { %513 = vsyncpa [#allocation9], 1 }
 0x2ce   :  { %514 = vsyncpa [#allocation12], 1 }
 0x2cf   :  { %515 = vsyncpa [#allocation7], 1 }

// kernel: tpu_custom_call.1
= control target key start
LH: loop header
LB: loop body
LE: loop exit
PB: predicated region body
PF: predicated region fallthrough
CT: control target
= control target key end

     0   :  { %16 = vsyncpa [#allocation6], 0  ;;  %s979_s0 = inlined_call_operand.hbm [shape: f32[16,128], index: 0, kind: input, shape index: {}]   ;;  %s980_s1 = inlined_call_operand.hbm [shape: f32[16,16], index: 1, kind: input, shape index: {}]   ;;  %s981_s2 = inlined_call_operand.vmem [shape: f32[1,128], index: 2, kind: input, shape index: {}]   ;;  %s982_s3 = inlined_call_operand.vmem [shape: f32[1,16], index: 3, kind: input, shape index: {}]   ;;  %s983_s4 = inlined_call_operand.vmem [shape: f32[1,128], index: 4, kind: input, shape index: {}]   ;;  %s984_s5 = inlined_call_operand.vmem [shape: f32[1,16], index: 5, kind: input, shape index: {}]   ;;  %s985_s6 = inlined_call_operand.hbm [shape: bf16[128,128], index: 6, kind: input, shape index: {}]   ;;  %s986_s7 = inlined_call_operand.vmem [shape: bf16[16,128], index: 7, kind: input, shape index: {}]   ;;  %s987_s8 = inlined_call_operand.vmem [shape: f32[1,128], index: 8, kind: input, shape index: {}]   ;;  %s988_s9 = inlined_call_operand.hbm [shape: bf16[128,128], index: 9, kind: input, shape index: {}]   ;;  %s989_s10 = inlined_call_operand.vmem [shape: f32[1,128], index: 10, kind: input, shape index: {}]   ;;  %s990_s11 = inlined_call_operand.hbm [shape: f32[16,128], index: 11, kind: output, shape index: {}]  }
   0x1   :  { %17 = vsyncpa [#allocation9], 0 }
   0x2   :  { %18 = vsyncpa [#allocation12], 0 }
   0x3   :  { %19 = vsyncpa [#allocation7], 0  ;;  %s756_s17 = smov [#allocation8]   ;;  %s757_s19 = smov [#allocation5]  }
   0x4   :  { %s37_s18 = sshll.u32 %s756_s17, 4  ;;  %s25_s20 = sshll.u32 %s757_s19, 4  ;;  %s38_s18 = int_to_ptr.vmem [resolvable:$true] %s37_s18  ;;  %s827_s20 = int_to_ptr.vmem [resolvable:$true] %s25_s20 }
   0x5   :  { %s638_s23 = scalar_lea.hbm %s980_s1, 256 }
   0x6   :  { %p639_p0 = scmp.ne.s32.totalorder %s980_s1, %s638_s23  ;;  %p642_p1 = scmp.lt.u32.totalorder %s638_s23, %s980_s1 }
   0x8   :  { %p644_p2 = pnand %p642_p1, %p639_p0 }
   0xa   :  { %647 = shalt.err (!%p644_p2)
}
   0xb   :  { %s648_s28 = scalar_lea.vmem %s38_s18, 256  ;;  %p653_p4 = scmp.lt.s32.totalorder %s38_s18, %s38_s18 }
   0xc   :  { %p649_p3 = scmp.ne.s32.totalorder %s38_s18, %s648_s28  ;;  %p654_p5 = scmp.lt.s32.totalorder %s648_s28, %s648_s28 }
   0xe   :  { %p655_p6 = por %p654_p5, %p653_p4 }
  0x10   :  { %p656_p7 = pnand %p655_p6, %p649_p3 }
  0x12   :  { %659 = shalt.err (!%p656_p7)
}
  0x13   :  { %s758_s29 = smov 128   ;;  %s759_s30 = smov 8  }
  0x14   :  { %43 = dma.hbm_to_vmem [thread:$0]  %s980_s1, 256, %s38_s18, [#allocation9], %s758_s29, %s758_s29, %s759_s30  }
  0x15   :  { %s660_s16 = scalar_lea.hbm %s979_s0, 256 }
  0x16   :  { %p661_p8 = scmp.ne.s32.totalorder %s979_s0, %s660_s16  ;;  %p664_p9 = scmp.lt.u32.totalorder %s660_s16, %s979_s0 }
  0x18   :  { %p666_p10 = pnand %p664_p9, %p661_p8 }
  0x1a   :  { %669 = shalt.err (!%p666_p10)
}
  0x1b   :  { %s670_s23 = scalar_lea.vmem %s827_s20, 256  ;;  %p675_p12 = scmp.lt.s32.totalorder %s827_s20, %s827_s20 }
  0x1c   :  { %p671_p11 = scmp.ne.s32.totalorder %s827_s20, %s670_s23  ;;  %p676_p13 = scmp.lt.s32.totalorder %s670_s23, %s670_s23 }
  0x1e   :  { %p677_p0 = por %p676_p13, %p675_p12 }
  0x20   :  { %p678_p1 = pnand %p677_p0, %p671_p11 }
  0x22   :  { %681 = shalt.err (!%p678_p1)
}
  0x23   :  { %31 = dma.hbm_to_vmem [thread:$0]  %s979_s0, 256, %s827_s20, [#allocation6], %s758_s29, %s758_s29, %s759_s30  }
  0x24   :  { %s760_s24 = smov [#allocation10]   ;;  %s682_s28 = scalar_lea.hbm %s985_s6, 1024 }
  0x25   :  { %s57_s25 = sshll.u32 %s760_s24, 4  ;;  %p683_p2 = scmp.ne.s32.totalorder %s985_s6, %s682_s28  ;;  %s58_s25 = int_to_ptr.vmem [resolvable:$true] %s57_s25 }
  0x26   :  { %p686_p3 = scmp.lt.u32.totalorder %s682_s28, %s985_s6 }
  0x28   :  { %p688_p4 = pnand %p686_p3, %p683_p2 }
  0x2a   :  { %691 = shalt.err (!%p688_p4)
}
  0x2b   :  { %s692_s16 = scalar_lea.vmem %s58_s25, 1024  ;;  %p697_p6 = scmp.lt.s32.totalorder %s58_s25, %s58_s25 }
  0x2c   :  { %p693_p5 = scmp.ne.s32.totalorder %s58_s25, %s692_s16  ;;  %p698_p7 = scmp.lt.s32.totalorder %s692_s16, %s692_s16 }
  0x2e   :  { %p699_p8 = por %p698_p7, %p697_p6 }
  0x30   :  { %p700_p9 = pnand %p699_p8, %p693_p5 }
  0x32   :  { %703 = shalt.err (!%p700_p9)
}
  0x33   :  { %s761_s0 = smov 64   ;;  %s762_s20 = smov 4  }
  0x34   :  { %63 = dma.hbm_to_vmem [thread:$0]  %s985_s6, 1024, %s58_s25, [#allocation9], %s761_s0, %s761_s0, %s762_s20  }
  0x35   :  { %s763_s21 = smov [#allocation11]   ;;  %s704_s18 = scalar_lea.hbm %s988_s9, 1024 }
  0x36   :  { %s73_s22 = sshll.u32 %s763_s21, 4  ;;  %p705_p10 = scmp.ne.s32.totalorder %s988_s9, %s704_s18  ;;  %s74_s22 = int_to_ptr.vmem [resolvable:$true] %s73_s22 }
  0x37   :  { %p708_p11 = scmp.lt.u32.totalorder %s704_s18, %s988_s9 }
  0x39   :  { %p710_p12 = pnand %p708_p11, %p705_p10 }
  0x3b   :  { %713 = shalt.err (!%p710_p12)
}
  0x3c   :  { %s714_s12 = scalar_lea.vmem %s74_s22, 1024  ;;  %p719_p0 = scmp.lt.s32.totalorder %s74_s22, %s74_s22 }
  0x3d   :  { %p715_p13 = scmp.ne.s32.totalorder %s74_s22, %s714_s12  ;;  %p720_p1 = scmp.lt.s32.totalorder %s714_s12, %s714_s12 }
  0x3f   :  { %p721_p2 = por %p720_p1, %p719_p0 }
  0x41   :  { %p722_p3 = pnand %p721_p2, %p715_p13 }
  0x43   :  { %725 = shalt.err (!%p722_p3)
}
  0x44   :  { %79 = dma.hbm_to_vmem [thread:$0]  %s988_s9, 1024, %s74_s22, [#allocation12], %s761_s0, %s761_s0, %s762_s20  }
  0x45   :  { %748 = dma.done.wait [#allocation6], 256  }
  0x46   :  { %749 = vsyncadd [#allocation6], 4294967040 }
  0x47   :  { %750 = dma.done.wait [#allocation9], 1280  }
  0x48   :  { %751 = vsyncadd [#allocation9], 4294966016 }
  0x49   :  { %752 = dma.done.wait [#allocation12], 1024  }
  0x4a   :  { %753 = vsyncadd [#allocation12], 4294966272  ;;  %vm113_vm0 = vcmask 130048   ;;  %v888_v0 = vld [vmem:[#allocation5] sm:$0xff]  ;;  %v890_v1 = vld [vmem:[#allocation8] sm:$0xff]  ;;  %v764_v13 = vmov 0.0  }
  0x4b   :  { %103 = vadd.xlane.f32.xlu0 %v888_v0  ;;  %v114_v2 = vsel %vm113_vm0, %v890_v1, 0.0  ;;  %v895_v3 = vld [vmem:[#allocation8 + $0x8] sm:$0xff]  ;;  %v122_v4 = vmul.f32 %v890_v1, %v890_v1  ;;  %v899_v5 = vld [vmem:[#allocation5 + $0x8] sm:$0xff]  ;;  %v107_v10 = vmul.f32 %v888_v0, %v888_v0  ;;  %v617_v12 = vld [vmem:[#allocation10] sm:$0xff]   ;;  %566 = vmatprep.subr.bf16.mxu1 %v764_v13  ;;  %vm765_vm1 = vmmov 0  }
  0x4c   :  { %115 = vadd.xlane.f32.xlu1 %v114_v2  ;;  %v123_v6 = vmul.f32 %v895_v3, %v895_v3  ;;  %v117_v7 = vsel %vm113_vm0, %v895_v3, 0.0  ;;  %v108_v11 = vmul.f32 %v899_v5, %v899_v5  ;;  %560 = vmatprep.subr.bf16.mxu0 %v764_v13  ;;  %v618_v14 = vld [vmem:[#allocation10 + $0x8] sm:$0xff]   ;;  %v619_v15 = vld [vmem:[#allocation10 + $0x10] sm:$0xff]   ;;  %v620_v16 = vld [vmem:[#allocation10 + $0x18] sm:$0xff]  }
  0x4d   :  { %v124_v8 = vsel %vm113_vm0, %v122_v4, 0.0  ;;  %567 = vmatpush3.bf16.msra.mxu1 %v617_v12  ;;  %v621_v17 = vld [vmem:[#allocation10 + $0x20] sm:$0xff]   ;;  %v622_v18 = vld [vmem:[#allocation10 + $0x28] sm:$0xff]   ;;  %v623_v19 = vld [vmem:[#allocation10 + $0x30] sm:$0xff]   ;;  %582 = vmatprep.mubr.msk.bf16.mxu1 %vm765_vm1, %v764_v13 }
  0x4e   :  { %v127_v9 = vsel %vm113_vm0, %v123_v6, 0.0  ;;  %568 = vmatprep.subr.bf16.mxu1 %v764_v13  ;;  %v624_v20 = vld [vmem:[#allocation10 + $0x38] sm:$0xff]   ;;  %562 = vmatprep.mubr.msk.bf16.mxu0 %vm765_vm1, %v764_v13  ;;  %v626_v6 = vld [vmem:[#allocation11] sm:$0xff]   ;;  %v631_v12 = vld [vmem:[#allocation11 + $0x28] sm:$0xff]  }
  0x4f   :  { %105 = vadd.xlane.f32.xlu0 %v899_v5  ;;  %v625_v21 = vld [vmem:[%s986_s7] sm:$0xff]  }
  0x50   :  { %118 = vadd.xlane.f32.xlu1 %v117_v7  ;;  %561 = vmatpush3.bf16.msra.mxu0 %v625_v21  ;;  %v518_v49 = vld [vmem:[%s982_s3] ss:$0 sm:$0xff] }
  0x51   :  { %569 = vmatpush3.bf16.msra.mxu1 %v618_v14  ;;  %586 = vmatprep.subr.bf16.mxu0 %v764_v13  ;;  %v516_v50 = vld [vmem:[%s981_s2] ss:$0 sm:$0xff]  ;;  %v632_v14 = vld [vmem:[#allocation11 + $0x30] sm:$0xff]  }
  0x52   :  { %570 = vmatprep.subr.bf16.mxu1 %v764_v13  ;;  %v519_v54 = vld [vmem:[%s984_s5] ss:$0 sm:$0xff] }
  0x53   :  { %109 = vadd.xlane.f32.xlu0 %v107_v10  ;;  %v517_v57 = vld [vmem:[%s983_s4] ss:$0 sm:$0xff] }
  0x54   :  { %111 = vadd.xlane.f32.xlu1 %v108_v11  ;;  %v629_v10 = vld [vmem:[#allocation11 + $0x18] sm:$0xff]   ;;  %v630_v11 = vld [vmem:[#allocation11 + $0x20] sm:$0xff]  }
  0x55   :  { %571 = vmatpush3.bf16.msra.mxu1 %v619_v15  ;;  %v633_v15 = vld [vmem:[#allocation11 + $0x38] sm:$0xff]  }
  0x56   :  { %572 = vmatprep.subr.bf16.mxu1 %v764_v13  ;;  %v530_v21 = vld [vmem:[%s987_s8] ss:$0 sm:$0xff]  ;;  %s766_s8 = smov [#allocation13]  }
  0x57   :  { %125 = vadd.xlane.f32.xlu0 %v124_v8  ;;  %v627_v8 = vld [vmem:[#allocation11 + $0x8] sm:$0xff]   ;;  %s502_s21 = sshll.u32 %s766_s8, 4  ;;  %s503_s21 = int_to_ptr.vmem [resolvable:$true] %s502_s21 }
  0x58   :  { %128 = vadd.xlane.f32.xlu1 %v127_v9  ;;  %v628_v9 = vld [vmem:[#allocation11 + $0x10] sm:$0xff]   ;;  %s726_s22 = scalar_lea.vmem %s503_s21, 256  ;;  %p731_p5 = scmp.lt.s32.totalorder %s503_s21, %s503_s21 }
  0x59   :  { %573 = vmatpush3.bf16.msra.mxu1 %v620_v16  ;;  %p727_p4 = scmp.ne.s32.totalorder %s503_s21, %s726_s22  ;;  %p732_p6 = scmp.lt.s32.totalorder %s726_s22, %s726_s22 }
  0x5a   :  { %574 = vmatprep.subr.bf16.mxu1 %v764_v13 }
  0x5b   :  { %p733_p7 = por %p732_p6, %p731_p5 }
  0x5d   :  { %575 = vmatpush3.bf16.msra.mxu1 %v621_v17  ;;  %p734_p8 = pnand %p733_p7, %p727_p4 }
  0x5e   :  { %576 = vmatprep.subr.bf16.mxu1 %v764_v13 }
  0x61   :  { %577 = vmatpush3.bf16.msra.mxu1 %v622_v18 }
  0x62   :  { %578 = vmatprep.subr.bf16.mxu1 %v764_v13 }
  0x65   :  { %579 = vmatpush3.bf16.msra.mxu1 %v623_v19 }
  0x66   :  { %580 = vmatprep.subr.bf16.mxu1 %v764_v13 }
  0x69   :  { %581 = vmatpush3.bf16.msra.mxu1 %v624_v20 }
  0xd8   :  { %v104_v22 = vpop.xlane.xlu0 %103 }
  0xd9   :  { %v116_v23 = vpop.xlane.xlu1 %115 }
  0xda   :  { %v120_v26 = vadd.f32 %v116_v23, %v104_v22 }
  0xdc   :  { %v106_v24 = vpop.xlane.xlu0 %105  ;;  %v132_v30 = vmul.f32 0.020833334, %v120_v26 }
  0xdd   :  { %v119_v25 = vpop.xlane.xlu1 %118 }
  0xde   :  { %v121_v27 = vadd.f32 %v119_v25, %v106_v24  ;;  %v136_v36 = vmul.f32 %v132_v30, %v132_v30  ;;  %v144_v44 = vsub.f32 %v888_v0, %v132_v30  ;;  %v168_v45 = vsub.f32 %v890_v1, %v132_v30 }
  0xe0   :  { %v110_v28 = vpop.xlane.xlu0 %109  ;;  %v133_v31 = vmul.f32 0.020833334, %v121_v27 }
  0xe1   :  { %v112_v29 = vpop.xlane.xlu1 %111 }
  0xe2   :  { %v137_v39 = vmul.f32 %v133_v31, %v133_v31  ;;  %v145_v47 = vsub.f32 %v899_v5, %v133_v31  ;;  %v169_v48 = vsub.f32 %v895_v3, %v133_v31  ;;  %v539_v31 = vld [vmem:[%s989_s10] ss:$0 sm:$0xff] }
  0xe4   :  { %v126_v32 = vpop.xlane.xlu0 %125 }
  0xe5   :  { %v130_v33 = vadd.f32 %v126_v32, %v110_v28  ;;  %v129_v34 = vpop.xlane.xlu1 %128 }
  0xe6   :  { %v131_v35 = vadd.f32 %v129_v34, %v112_v29 }
  0xe7   :  { %v134_v37 = vmul.f32 0.020833334, %v130_v33 }
  0xe8   :  { %v135_v38 = vmul.f32 0.020833334, %v131_v35 }
  0xe9   :  { %v138_v40 = vsub.f32 %v134_v37, %v136_v36 }
  0xea   :  { %v139_v41 = vsub.f32 %v135_v38, %v137_v39 }
  0xeb   :  { %v140_v42 = vadd.f32 1e-05, %v138_v40 }
  0xec   :  { %v141_v43 = vadd.f32 1e-05, %v139_v41 }
  0xed   :  { %634 = vrsqrt.f32 %v140_v42 }
  0xee   :  { %636 = vrsqrt.f32 %v141_v43 }
  0xf7   :  { %v635_v46 = vpop.eup %634 }
  0xf8   :  { %v637_v51 = vpop.eup %636  ;;  %v170_v52 = vmul.f32 %v635_v46, %v168_v45  ;;  %v146_v53 = vmul.f32 %v635_v46, %v144_v44 }
  0xf9   :  { %v171_v55 = vmul.f32 %v637_v51, %v169_v48  ;;  %v147_v56 = vmul.f32 %v637_v51, %v145_v47 }
  0xfa   :  { %v179_v58 = vmul.f32 %v518_v49, %v170_v52  ;;  %v155_v59 = vmul.f32 %v516_v50, %v146_v53 }
  0xfb   :  { %v180_v60 = vmul.f32 %v518_v49, %v171_v55  ;;  %v156_v61 = vmul.f32 %v516_v50, %v147_v56 }
  0xfc   :  { %v188_v62 = vadd.f32 %v519_v54, %v179_v58  ;;  %v164_v63 = vadd.f32 %v517_v57, %v155_v59 }
  0xfd   :  { %v189_v1 = vadd.f32 %v519_v54, %v180_v60  ;;  %v165_v2 = vadd.f32 %v517_v57, %v156_v61 }
  0xff   :  { %v190_v3 = vpack.c.bf16 %v189_v1, %v188_v62  ;;  %v166_v4 = vpack.c.bf16 %v165_v2, %v164_v63 }
 0x101   :  { %191 = vst.msk [vmem:[#allocation3] sm:$0xff] %vm113_vm0, %v190_v3  ;;  %583 = vmatmul.mubr.bf16.vlgmr.msra.gmra.mrb[0].mxu1 %v166_v4 }
 0x108   :  { %v211_v7 = vld [vmem:[#allocation3] sm:$0xff] }
 0x109   :  { %563 = vmatmul.mubr.msk.bf16.vlgmr.msra.gmra.mrb[0].mxu0 %vm113_vm0, %v211_v7 }
 0x10a   :  { %587 = vmatpush3.bf16.msra.mxu0 %v626_v6  ;;  %602 = vmatprep.mubr.msk.bf16.mxu0 %vm765_vm1, %v764_v13 }
 0x10b   :  { %588 = vmatprep.subr.bf16.mxu0 %v764_v13 }
 0x10e   :  { %589 = vmatpush3.bf16.msra.mxu0 %v627_v8 }
 0x10f   :  { %590 = vmatprep.subr.bf16.mxu0 %v764_v13 }
 0x112   :  { %591 = vmatpush3.bf16.msra.mxu0 %v628_v9 }
 0x113   :  { %592 = vmatprep.subr.bf16.mxu0 %v764_v13 }
 0x116   :  { %593 = vmatpush3.bf16.msra.mxu0 %v629_v10 }
 0x117   :  { %594 = vmatprep.subr.bf16.mxu0 %v764_v13 }
 0x11a   :  { %595 = vmatpush3.bf16.msra.mxu0 %v630_v11 }
 0x11b   :  { %596 = vmatprep.subr.bf16.mxu0 %v764_v13 }
 0x11e   :  { %597 = vmatpush3.bf16.msra.mxu0 %v631_v12 }
 0x11f   :  { %598 = vmatprep.subr.bf16.mxu0 %v764_v13 }
 0x122   :  { %599 = vmatpush3.bf16.msra.mxu0 %v632_v14 }
 0x123   :  { %600 = vmatprep.subr.bf16.mxu0 %v764_v13 }
 0x126   :  { %601 = vmatpush3.bf16.msra.mxu0 %v633_v15 }
 0x1d4   :  { %v347_v16 = vpop.f32.mrb[0].mxu1 }
 0x1d5   :  { %v584_v17 = vpop.f32.mrb[1].mxu1 }
 0x1d6   :  { %v350_v18 = vpop.f32.mrb[2].mxu1 }
 0x1d7   :  { %v585_v19 = vpop.f32.mrb[3].mxu1 }
 0x1dc   :  { %v258_v20 = vpop.f32.mrb[0].mxu0 }
 0x1dd   :  { %v348_v22 = vadd.f32 %v347_v16, %v258_v20  ;;  %v564_v23 = vpop.f32.mrb[1].mxu0 }
 0x1de   :  { %v261_v24 = vpop.f32.mrb[2].mxu0 }
 0x1df   :  { %v361_v25 = vadd.f32 %v530_v21, %v348_v22  ;;  %v351_v26 = vadd.f32 %v350_v18, %v261_v24  ;;  %v565_v27 = vpop.f32.mrb[3].mxu0 }
 0x1e1   :  { %v362_v28 = vadd.f32 %v530_v21, %v351_v26  ;;  %v363_v29 = vmax.f32 %v361_v25, 0.0 }
 0x1e3   :  { %v364_v13 = vmax.f32 %v362_v28, 0.0 }
 0x1e5   :  { %v367_v30 = vpack.c.bf16 %v364_v13, %v363_v29 }
 0x1e7   :  { %603 = vmatmul.mubr.bf16.vlgmr.msra.gmra.mrb[4].mxu0 %v367_v30 }
 0x2ba   :  { %v466_v32 = vpop.f32.mrb[4].mxu0 }
 0x2bb   :  { %v491_v33 = vadd.f32 %v539_v31, %v466_v32  ;;  %v604_v34 = vpop.f32.mrb[5].mxu0 }
 0x2bc   :  { %v469_v35 = vpop.f32.mrb[6].mxu0 }
 0x2bd   :  { %v493_v36 = vadd.f32 %v491_v33, %v888_v0  ;;  %v492_v37 = vadd.f32 %v539_v31, %v469_v35  ;;  %v605_v38 = vpop.f32.mrb[7].mxu0 }
 0x2bf   :  { %495 = vst [vmem:[#allocation13] sm:$0xff] %v493_v36  ;;  %v494_v39 = vadd.f32 %v492_v37, %v899_v5 }
 0x2c1   :  { %496 = vst [vmem:[#allocation13 + $0x8] sm:$0xff] %v494_v39 }
 0x2c2   :  { %737 = shalt.err (!%p734_p8)
}
 0x2c3   :  { %s738_s1 = scalar_lea.hbm %s990_s11, 256 }
 0x2c4   :  { %p739_p9 = scmp.ne.s32.totalorder %s990_s11, %s738_s1  ;;  %p742_p10 = scmp.lt.u32.totalorder %s738_s1, %s990_s11 }
 0x2c6   :  { %p744_p11 = pnand %p742_p10, %p739_p9 }
 0x2c8   :  { %747 = shalt.err (!%p744_p11)
}
 0x2c9   :  { %508 = dma.vmem_to_hbm [thread:$0]  %s503_s21, 256, %s990_s11, [#allocation7], %s758_s29, %s758_s29, %s759_s30  }
 0x2ca   :  { %754 = dma.done.wait [#allocation7], 256  }
 0x2cb   :  { %755 = vsyncadd [#allocation7], 4294967040 }
 0x2cc   :  { %512 = vsyncpa [#allocation6], 1 }
 0x2cd   :  { %513 = vsyncpa [#allocation9], 1 }
 0x2ce   :  { %514 = vsyncpa [#allocation12], 1 }
 0x2cf   :  { %515 = vsyncpa [#allocation7], 1 }

</bundles_post_ra>
